<compile_context>
chip_gen: v6e
topology: v6e:2x2x1
jax: 0.10.0
libtpu: 0.0.40
codegen_flags: <defaults>
</compile_context>

<pallas_src>
import jax
import jax.numpy as jnp
import numpy as np
from jax import lax
from jax.experimental import pallas as pl
from jax.experimental.pallas import tpu as pltpu

HIDDEN = 32     # hidden_size
OUTPUT = 128    # output_size (vocab) -- 128 keeps the output lane-dense
SEQ_LEN = 8     # number of decode steps fused into one kernel call


def decoder_seq_kernel(ids_ref,            # SMEM, (T,) int32 token ids (scalar prefetch)
                       emb_ref,            # (O, H)   full embedding table (resident)
                       h0_ref,             # (1, H)   initial hidden state
                       wg_ref,             # (2H, 4H) packed GRU gate weights
                       bg_ref,             # (1, 4H)  packed GRU gate bias
                       wo_ref,             # (H, O)   output projection
                       bo_ref,             # (1, O)   output bias
                       logp_ref,           # (T, O)   all per-step log-softmax rows
                       h_out_ref):         # (1, H)   final hidden state
    T = logp_ref.shape[0]
    H = h0_ref.shape[-1]

    # Hoist all parameters into vregs once; the loop below is fully unrolled.
    wg = wg_ref[...]
    bg = bg_ref[...]
    wo = wo_ref[...]
    bo = bo_ref[...]

    def step(t, h):
        tok = ids_ref[t]
        # relu(embedding(token)) -- gather one row of the resident VMEM table.
        x = jnp.maximum(emb_ref[pl.ds(tok, 1), :], 0.0)              # (1, H)

        # Fused gate matmul: [x | h] @ W_gates -> [rz_pre | gi_n | gh_n]
        xh = jnp.concatenate([x, h], axis=-1)                        # (1, 2H)
        g = jnp.dot(xh, wg, preferred_element_type=jnp.float32) + bg  # (1, 4H)

        r = jax.nn.sigmoid(g[:, 0:H])
        z = jax.nn.sigmoid(g[:, H:2 * H])
        n = jnp.tanh(g[:, 2 * H:3 * H] + r * g[:, 3 * H:4 * H])
        h_new = (1.0 - z) * n + z * h

        # Linear + LogSoftmax(dim=1); off the recurrence critical path, so it
        # can be hidden under the next step's gate matmul in the unrolled code.
        logits = jnp.dot(h_new, wo, preferred_element_type=jnp.float32) + bo
        m = jnp.max(logits, axis=-1, keepdims=True)
        lse = jnp.log(jnp.sum(jnp.exp(logits - m), axis=-1, keepdims=True)) + m
        logp_ref[pl.ds(t, 1), :] = logits - lse
        return h_new

    # Hidden state carried in vregs; fully unrolled (short fixed trip count).
    h_final = lax.fori_loop(0, T, step, h0_ref[...], unroll=True)
    h_out_ref[...] = h_final


def decoder_decode(token_ids, hidden, params):
    """Fused multi-step decode: one pallas_call for all T tokens.

    token_ids : (T,) int32
    hidden    : (1, 1, H) float32 initial hidden state
    returns   : (log_probs (T, O), final_hidden (1, 1, H))
    """
    T = token_ids.shape[0]
    H, O = HIDDEN, OUTPUT
    h0 = hidden.reshape(1, H)

    grid_spec = pltpu.PrefetchScalarGridSpec(
        num_scalar_prefetch=1,
        grid=(1,),
        in_specs=[
            # Whole embedding table resident in VMEM (one 16 KiB DMA).
            pl.BlockSpec((O, H), lambda i, ids: (0, 0)),
            # Initial hidden state.
            pl.BlockSpec((1, H), lambda i, ids: (0, 0)),
            # Weights / biases: constant block index -> DMA'd once.
            pl.BlockSpec((2 * H, 4 * H), lambda i, ids: (0, 0)),
            pl.BlockSpec((1, 4 * H), lambda i, ids: (0, 0)),
            pl.BlockSpec((H, O), lambda i, ids: (0, 0)),
            pl.BlockSpec((1, O), lambda i, ids: (0, 0)),
        ],
        out_specs=[
            # All T log-prob rows as one lane-dense f32 tile, written back once.
            pl.BlockSpec((T, O), lambda i, ids: (0, 0)),
            # Final hidden state, written once.
            pl.BlockSpec((1, H), lambda i, ids: (0, 0)),
        ],
    )

    logp, h_last = pl.pallas_call(
        decoder_seq_kernel,
        grid_spec=grid_spec,
        out_shape=[
            jax.ShapeDtypeStruct((T, O), jnp.float32),
            jax.ShapeDtypeStruct((1, H), jnp.float32),
        ],
        compiler_params=pltpu.CompilerParams(
            dimension_semantics=("arbitrary",)),
    )(token_ids.astype(jnp.int32), params["embedding"], h0,
      params["w_gates"], params["b_gates"], params["w_out_t"], params["b_out"])

    return logp, h_last.reshape(1, 1, H)


def decoder_forward(token_id, hidden, params):
    """Single-step API matching DecoderRNN.forward(input, hidden)."""
    ids = jnp.asarray(token_id, jnp.int32).reshape(1)
    logp, h_new = decoder_decode(ids, hidden, params)
    return logp, h_new        # logp: (1, O), h_new: (1, 1, H)


def init_params(key):
    """Deterministic parameter init mirroring the torch module's shapes.

    Keeps the torch-layout parameters (for the reference) and additionally
    packs the fused gate weight/bias used by the kernel.
    """
    H, O = HIDDEN, OUTPUT
    ks = jax.random.split(key, 7)
    bound = 1.0 / np.sqrt(H)

    embedding = jax.random.normal(ks[0], (O, H), jnp.float32)
    # nn.GRU weights stored transposed (H, 3H), gate/column order [r | z | n]
    w_ih_t = jax.random.uniform(ks[1], (H, 3 * H), jnp.float32, -bound, bound)
    w_hh_t = jax.random.uniform(ks[2], (H, 3 * H), jnp.float32, -bound, bound)
    b_ih = jax.random.uniform(ks[3], (1, 3 * H), jnp.float32, -bound, bound)
    b_hh = jax.random.uniform(ks[4], (1, 3 * H), jnp.float32, -bound, bound)
    # nn.Linear(hidden_size, output_size), stored transposed (H, O)
    w_out_t = jax.random.uniform(ks[5], (H, O), jnp.float32, -bound, bound)
    b_out = jax.random.uniform(ks[6], (1, O), jnp.float32, -bound, bound)

    # Pack fused gate weight (2H, 4H): rows 0:H multiply x, rows H:2H multiply h.
    # Column layout: [ r+z (2H) | n_input (H) | n_hidden (H) ]
    zeros = jnp.zeros((H, H), jnp.float32)
    w_gates = jnp.concatenate([
        jnp.concatenate([w_ih_t[:, :2 * H], w_ih_t[:, 2 * H:], zeros], axis=1),
        jnp.concatenate([w_hh_t[:, :2 * H], zeros, w_hh_t[:, 2 * H:]], axis=1),
    ], axis=0)
    # Pre-summed r/z biases; n-gate biases kept separate (torch GRU semantics).
    b_gates = jnp.concatenate([
        b_ih[:, :2 * H] + b_hh[:, :2 * H], b_ih[:, 2 * H:], b_hh[:, 2 * H:]],
        axis=1)

    return {
        "embedding": embedding,
        "w_ih_t": w_ih_t, "w_hh_t": w_hh_t, "b_ih": b_ih, "b_hh": b_hh,
        "w_out_t": w_out_t, "b_out": b_out,
        "w_gates": w_gates, "b_gates": b_gates,
    }


def decoder_seq_ref(token_ids, hidden, params):
    """Pure-JAX reference of the same multi-step decode (torch GRU math)."""
    H = HIDDEN
    h = hidden.reshape(1, H)
    logps = []
    for tok in np.asarray(token_ids):
        x = jnp.maximum(params["embedding"][int(tok)].reshape(1, H), 0.0)
        gi = x @ params["w_ih_t"] + params["b_ih"]
        gh = h @ params["w_hh_t"] + params["b_hh"]
        r = jax.nn.sigmoid(gi[:, :H] + gh[:, :H])
        z = jax.nn.sigmoid(gi[:, H:2 * H] + gh[:, H:2 * H])
        n = jnp.tanh(gi[:, 2 * H:] + r * gh[:, 2 * H:])
        h = (1.0 - z) * n + z * h
        logits = h @ params["w_out_t"] + params["b_out"]
        logps.append(jax.nn.log_softmax(logits, axis=1))
    return jnp.concatenate(logps, axis=0), h.reshape(1, 1, H)


if __name__ == "__main__":
    key = jax.random.PRNGKey(0)
    pkey, hkey, tkey = jax.random.split(key, 3)
    params = init_params(pkey)

    hidden = jax.random.normal(hkey, (1, 1, HIDDEN), jnp.float32)
    token_ids = jax.random.randint(tkey, (SEQ_LEN,), 0, OUTPUT, dtype=jnp.int32)

    # Fused multi-step decode (one pallas_call, in-kernel unrolled loop).
    logp, h_new = decoder_decode(token_ids, hidden, params)
    logp = jax.block_until_ready(logp)
    h_new = jax.block_until_ready(h_new)

    # Correctness vs. pure-JAX reference (torch-layout parameters).
    logp_ref, h_ref = decoder_seq_ref(token_ids, hidden, params)
    np.testing.assert_allclose(np.asarray(logp), np.asarray(logp_ref),
                               rtol=2e-5, atol=2e-5)
    np.testing.assert_allclose(np.asarray(h_new), np.asarray(h_ref),
                               rtol=2e-5, atol=2e-5)
    assert logp.shape == (SEQ_LEN, OUTPUT) and h_new.shape == (1, 1, HIDDEN)

    # Single-step API identical to DecoderRNN.forward(input, hidden).
    logp1, h1 = decoder_forward(token_ids[0], hidden, params)
    logp1 = jax.block_until_ready(logp1)
    np.testing.assert_allclose(np.asarray(logp1), np.asarray(logp_ref[0:1]),
                               rtol=2e-5, atol=2e-5)
    assert logp1.shape == (1, OUTPUT) and h1.shape == (1, 1, HIDDEN)

    print("KERNEL_OK")
</pallas_src>

<mosaic_0001>
module attributes {stable_mosaic.version = 11 : i64} {
  func.func @decoder_seq_kernel(%arg0: i32, %arg1: memref<8xi32, #tpu.memory_space<smem>>, %arg2: memref<128x32xf32, #tpu.memory_space<vmem>>, %arg3: memref<1x32xf32, #tpu.memory_space<vmem>>, %arg4: memref<64x128xf32, #tpu.memory_space<vmem>>, %arg5: memref<1x128xf32, #tpu.memory_space<vmem>>, %arg6: memref<32x128xf32, #tpu.memory_space<vmem>>, %arg7: memref<1x128xf32, #tpu.memory_space<vmem>>, %arg8: memref<8x128xf32, #tpu.memory_space<vmem>>, %arg9: memref<1x32xf32, #tpu.memory_space<vmem>>) attributes {dimension_semantics = [#tpu.dimension_semantics<arbitrary>], iteration_bounds = array<i64: 1>, scalar_prefetch = 1 : i64, scratch_operands = 0 : i64, tpu.core_type = #tpu.core_type<tc>, window_params = [{pipeline_mode = #tpu.pipeline_mode<synchronous>, transform_indices = @transform_0, window_bounds = array<i64: 128, 32>}, {pipeline_mode = #tpu.pipeline_mode<synchronous>, transform_indices = @transform_1, window_bounds = array<i64: 1, 32>}, {pipeline_mode = #tpu.pipeline_mode<synchronous>, transform_indices = @transform_2, window_bounds = array<i64: 64, 128>}, {pipeline_mode = #tpu.pipeline_mode<synchronous>, transform_indices = @transform_3, window_bounds = array<i64: 1, 128>}, {pipeline_mode = #tpu.pipeline_mode<synchronous>, transform_indices = @transform_4, window_bounds = array<i64: 32, 128>}, {pipeline_mode = #tpu.pipeline_mode<synchronous>, transform_indices = @transform_5, window_bounds = array<i64: 1, 128>}, {pipeline_mode = #tpu.pipeline_mode<synchronous>, transform_indices = @transform_6, window_bounds = array<i64: 8, 128>}, {pipeline_mode = #tpu.pipeline_mode<synchronous>, transform_indices = @transform_7, window_bounds = array<i64: 1, 32>}]} {
    %c0 = arith.constant 0 : index
    %c0_0 = arith.constant 0 : index
    %0 = vector.load %arg4[%c0, %c0_0] : memref<64x128xf32, #tpu.memory_space<vmem>>, vector<64x128xf32>
    %c0_1 = arith.constant 0 : index
    %c0_2 = arith.constant 0 : index
    %1 = vector.load %arg5[%c0_1, %c0_2] : memref<1x128xf32, #tpu.memory_space<vmem>>, vector<1x128xf32>
    %c0_3 = arith.constant 0 : index
    %c0_4 = arith.constant 0 : index
    %2 = vector.load %arg6[%c0_3, %c0_4] : memref<32x128xf32, #tpu.memory_space<vmem>>, vector<32x128xf32>
    %c0_5 = arith.constant 0 : index
    %c0_6 = arith.constant 0 : index
    %3 = vector.load %arg7[%c0_5, %c0_6] : memref<1x128xf32, #tpu.memory_space<vmem>>, vector<1x128xf32>
    %c0_7 = arith.constant 0 : index
    %c0_8 = arith.constant 0 : index
    %4 = vector.load %arg3[%c0_7, %c0_8] : memref<1x32xf32, #tpu.memory_space<vmem>>, vector<1x32xf32>
    %c0_i32 = arith.constant 0 : i32
    %5 = arith.index_cast %c0_i32 : i32 to index
    %6 = memref.load %arg1[%5] : memref<8xi32, #tpu.memory_space<smem>>
    %7 = arith.index_cast %6 : i32 to index
    %c0_9 = arith.constant 0 : index
    %8 = vector.load %arg2[%7, %c0_9] : memref<128x32xf32, #tpu.memory_space<vmem>>, vector<1x32xf32>
    %cst = arith.constant 0.000000e+00 : f32
    %9 = vector.broadcast %cst : f32 to vector<1x32xf32>
    %10 = arith.maximumf %8, %9 : vector<1x32xf32>
    %11 = tpu.concatenate %10, %4 in 1 : vector<1x32xf32>, vector<1x32xf32> -> vector<1x64xf32>
    %cst_10 = arith.constant dense<0.000000e+00> : vector<1x128xf32>
    %12 = tpu.matmul %11, %0, %cst_10 {dimension_numbers = #tpu.dot_dimension_numbers<[1], [0], [0], [1], [0, 0, 1, 1], [], []>} : vector<1x64xf32>, vector<64x128xf32>, vector<1x128xf32> -> vector<1x128xf32>
    %13 = arith.addf %12, %1 : vector<1x128xf32>
    %14 = vector.extract_strided_slice %13 {offsets = [0, 0], sizes = [1, 32], strides = [1, 1]} : vector<1x128xf32> to vector<1x32xf32>
    %15 = arith.negf %14 : vector<1x32xf32>
    %16 = math.exp %15 : vector<1x32xf32>
    %cst_11 = arith.constant 1.000000e+00 : f32
    %17 = vector.broadcast %cst_11 : f32 to vector<1x32xf32>
    %18 = arith.addf %17, %16 : vector<1x32xf32>
    %19 = arith.divf %17, %18 : vector<1x32xf32>
    %20 = vector.extract_strided_slice %13 {offsets = [0, 32], sizes = [1, 32], strides = [1, 1]} : vector<1x128xf32> to vector<1x32xf32>
    %21 = arith.negf %20 : vector<1x32xf32>
    %22 = math.exp %21 : vector<1x32xf32>
    %cst_12 = arith.constant 1.000000e+00 : f32
    %23 = vector.broadcast %cst_12 : f32 to vector<1x32xf32>
    %24 = arith.addf %23, %22 : vector<1x32xf32>
    %25 = arith.divf %23, %24 : vector<1x32xf32>
    %26 = vector.extract_strided_slice %13 {offsets = [0, 64], sizes = [1, 32], strides = [1, 1]} : vector<1x128xf32> to vector<1x32xf32>
    %27 = vector.extract_strided_slice %13 {offsets = [0, 96], sizes = [1, 32], strides = [1, 1]} : vector<1x128xf32> to vector<1x32xf32>
    %28 = arith.mulf %19, %27 : vector<1x32xf32>
    %29 = arith.addf %26, %28 : vector<1x32xf32>
    %30 = math.tanh %29 : vector<1x32xf32>
    %cst_13 = arith.constant 1.000000e+00 : f32
    %31 = vector.broadcast %cst_13 : f32 to vector<1x32xf32>
    %32 = arith.subf %31, %25 : vector<1x32xf32>
    %33 = arith.mulf %32, %30 : vector<1x32xf32>
    %34 = arith.mulf %25, %4 : vector<1x32xf32>
    %35 = arith.addf %33, %34 : vector<1x32xf32>
    %cst_14 = arith.constant dense<0.000000e+00> : vector<1x128xf32>
    %36 = tpu.matmul %35, %2, %cst_14 {dimension_numbers = #tpu.dot_dimension_numbers<[1], [0], [0], [1], [0, 0, 1, 1], [], []>} : vector<1x32xf32>, vector<32x128xf32>, vector<1x128xf32> -> vector<1x128xf32>
    %37 = arith.addf %36, %3 : vector<1x128xf32>
    %cst_15 = arith.constant dense<0xFF800000> : vector<1xf32>
    %38 = vector.multi_reduction <maximumf>, %37, %cst_15 [1] : vector<1x128xf32> to vector<1xf32>
    %39 = vector.shape_cast %38 : vector<1xf32> to vector<1x1xf32>
    %40 = vector.broadcast %39 : vector<1x1xf32> to vector<1x128xf32>
    %41 = arith.subf %37, %40 : vector<1x128xf32>
    %42 = math.exp %41 : vector<1x128xf32>
    %cst_16 = arith.constant dense<0.000000e+00> : vector<1xf32>
    %43 = vector.multi_reduction <add>, %42, %cst_16 [1] : vector<1x128xf32> to vector<1xf32>
    %44 = vector.shape_cast %43 : vector<1xf32> to vector<1x1xf32>
    %45 = math.log %44 : vector<1x1xf32>
    %46 = arith.addf %45, %39 : vector<1x1xf32>
    %47 = vector.broadcast %46 : vector<1x1xf32> to vector<1x128xf32>
    %48 = arith.subf %37, %47 : vector<1x128xf32>
    %49 = arith.index_cast %c0_i32 : i32 to index
    %c0_17 = arith.constant 0 : index
    %50 = vector.load %arg8[%49, %c0_17] : memref<8x128xf32, #tpu.memory_space<vmem>>, vector<1x128xf32>
    tpu.vector_store %arg8[%49, %c0_17], %48 {strides = array<i32>} : memref<8x128xf32, #tpu.memory_space<vmem>>, vector<1x128xf32>,
    %c1_i32 = arith.constant 1 : i32
    %51 = arith.index_cast %c1_i32 : i32 to index
    %52 = memref.load %arg1[%51] : memref<8xi32, #tpu.memory_space<smem>>
    %53 = arith.index_cast %52 : i32 to index
    %c0_18 = arith.constant 0 : index
    %54 = vector.load %arg2[%53, %c0_18] : memref<128x32xf32, #tpu.memory_space<vmem>>, vector<1x32xf32>
    %cst_19 = arith.constant 0.000000e+00 : f32
    %55 = vector.broadcast %cst_19 : f32 to vector<1x32xf32>
    %56 = arith.maximumf %54, %55 : vector<1x32xf32>
    %57 = tpu.concatenate %56, %35 in 1 : vector<1x32xf32>, vector<1x32xf32> -> vector<1x64xf32>
    %cst_20 = arith.constant dense<0.000000e+00> : vector<1x128xf32>
    %58 = tpu.matmul %57, %0, %cst_20 {dimension_numbers = #tpu.dot_dimension_numbers<[1], [0], [0], [1], [0, 0, 1, 1], [], []>} : vector<1x64xf32>, vector<64x128xf32>, vector<1x128xf32> -> vector<1x128xf32>
    %59 = arith.addf %58, %1 : vector<1x128xf32>
    %60 = vector.extract_strided_slice %59 {offsets = [0, 0], sizes = [1, 32], strides = [1, 1]} : vector<1x128xf32> to vector<1x32xf32>
    %61 = arith.negf %60 : vector<1x32xf32>
    %62 = math.exp %61 : vector<1x32xf32>
    %cst_21 = arith.constant 1.000000e+00 : f32
    %63 = vector.broadcast %cst_21 : f32 to vector<1x32xf32>
    %64 = arith.addf %63, %62 : vector<1x32xf32>
    %65 = arith.divf %63, %64 : vector<1x32xf32>
    %66 = vector.extract_strided_slice %59 {offsets = [0, 32], sizes = [1, 32], strides = [1, 1]} : vector<1x128xf32> to vector<1x32xf32>
    %67 = arith.negf %66 : vector<1x32xf32>
    %68 = math.exp %67 : vector<1x32xf32>
    %cst_22 = arith.constant 1.000000e+00 : f32
    %69 = vector.broadcast %cst_22 : f32 to vector<1x32xf32>
    %70 = arith.addf %69, %68 : vector<1x32xf32>
    %71 = arith.divf %69, %70 : vector<1x32xf32>
    %72 = vector.extract_strided_slice %59 {offsets = [0, 64], sizes = [1, 32], strides = [1, 1]} : vector<1x128xf32> to vector<1x32xf32>
    %73 = vector.extract_strided_slice %59 {offsets = [0, 96], sizes = [1, 32], strides = [1, 1]} : vector<1x128xf32> to vector<1x32xf32>
    %74 = arith.mulf %65, %73 : vector<1x32xf32>
    %75 = arith.addf %72, %74 : vector<1x32xf32>
    %76 = math.tanh %75 : vector<1x32xf32>
    %cst_23 = arith.constant 1.000000e+00 : f32
    %77 = vector.broadcast %cst_23 : f32 to vector<1x32xf32>
    %78 = arith.subf %77, %71 : vector<1x32xf32>
    %79 = arith.mulf %78, %76 : vector<1x32xf32>
    %80 = arith.mulf %71, %35 : vector<1x32xf32>
    %81 = arith.addf %79, %80 : vector<1x32xf32>
    %cst_24 = arith.constant dense<0.000000e+00> : vector<1x128xf32>
    %82 = tpu.matmul %81, %2, %cst_24 {dimension_numbers = #tpu.dot_dimension_numbers<[1], [0], [0], [1], [0, 0, 1, 1], [], []>} : vector<1x32xf32>, vector<32x128xf32>, vector<1x128xf32> -> vector<1x128xf32>
    %83 = arith.addf %82, %3 : vector<1x128xf32>
    %cst_25 = arith.constant dense<0xFF800000> : vector<1xf32>
    %84 = vector.multi_reduction <maximumf>, %83, %cst_25 [1] : vector<1x128xf32> to vector<1xf32>
    %85 = vector.shape_cast %84 : vector<1xf32> to vector<1x1xf32>
    %86 = vector.broadcast %85 : vector<1x1xf32> to vector<1x128xf32>
    %87 = arith.subf %83, %86 : vector<1x128xf32>
    %88 = math.exp %87 : vector<1x128xf32>
    %cst_26 = arith.constant dense<0.000000e+00> : vector<1xf32>
    %89 = vector.multi_reduction <add>, %88, %cst_26 [1] : vector<1x128xf32> to vector<1xf32>
    %90 = vector.shape_cast %89 : vector<1xf32> to vector<1x1xf32>
    %91 = math.log %90 : vector<1x1xf32>
    %92 = arith.addf %91, %85 : vector<1x1xf32>
    %93 = vector.broadcast %92 : vector<1x1xf32> to vector<1x128xf32>
    %94 = arith.subf %83, %93 : vector<1x128xf32>
    %95 = arith.index_cast %c1_i32 : i32 to index
    %c0_27 = arith.constant 0 : index
    %96 = vector.load %arg8[%95, %c0_27] : memref<8x128xf32, #tpu.memory_space<vmem>>, vector<1x128xf32>
    tpu.vector_store %arg8[%95, %c0_27], %94 {strides = array<i32>} : memref<8x128xf32, #tpu.memory_space<vmem>>, vector<1x128xf32>,
    %c2_i32 = arith.constant 2 : i32
    %97 = arith.index_cast %c2_i32 : i32 to index
    %98 = memref.load %arg1[%97] : memref<8xi32, #tpu.memory_space<smem>>
    %99 = arith.index_cast %98 : i32 to index
    %c0_28 = arith.constant 0 : index
    %100 = vector.load %arg2[%99, %c0_28] : memref<128x32xf32, #tpu.memory_space<vmem>>, vector<1x32xf32>
    %cst_29 = arith.constant 0.000000e+00 : f32
    %101 = vector.broadcast %cst_29 : f32 to vector<1x32xf32>
    %102 = arith.maximumf %100, %101 : vector<1x32xf32>
    %103 = tpu.concatenate %102, %81 in 1 : vector<1x32xf32>, vector<1x32xf32> -> vector<1x64xf32>
    %cst_30 = arith.constant dense<0.000000e+00> : vector<1x128xf32>
    %104 = tpu.matmul %103, %0, %cst_30 {dimension_numbers = #tpu.dot_dimension_numbers<[1], [0], [0], [1], [0, 0, 1, 1], [], []>} : vector<1x64xf32>, vector<64x128xf32>, vector<1x128xf32> -> vector<1x128xf32>
    %105 = arith.addf %104, %1 : vector<1x128xf32>
    %106 = vector.extract_strided_slice %105 {offsets = [0, 0], sizes = [1, 32], strides = [1, 1]} : vector<1x128xf32> to vector<1x32xf32>
    %107 = arith.negf %106 : vector<1x32xf32>
    %108 = math.exp %107 : vector<1x32xf32>
    %cst_31 = arith.constant 1.000000e+00 : f32
    %109 = vector.broadcast %cst_31 : f32 to vector<1x32xf32>
    %110 = arith.addf %109, %108 : vector<1x32xf32>
    %111 = arith.divf %109, %110 : vector<1x32xf32>
    %112 = vector.extract_strided_slice %105 {offsets = [0, 32], sizes = [1, 32], strides = [1, 1]} : vector<1x128xf32> to vector<1x32xf32>
    %113 = arith.negf %112 : vector<1x32xf32>
    %114 = math.exp %113 : vector<1x32xf32>
    %cst_32 = arith.constant 1.000000e+00 : f32
    %115 = vector.broadcast %cst_32 : f32 to vector<1x32xf32>
    %116 = arith.addf %115, %114 : vector<1x32xf32>
    %117 = arith.divf %115, %116 : vector<1x32xf32>
    %118 = vector.extract_strided_slice %105 {offsets = [0, 64], sizes = [1, 32], strides = [1, 1]} : vector<1x128xf32> to vector<1x32xf32>
    %119 = vector.extract_strided_slice %105 {offsets = [0, 96], sizes = [1, 32], strides = [1, 1]} : vector<1x128xf32> to vector<1x32xf32>
    %120 = arith.mulf %111, %119 : vector<1x32xf32>
    %121 = arith.addf %118, %120 : vector<1x32xf32>
    %122 = math.tanh %121 : vector<1x32xf32>
    %cst_33 = arith.constant 1.000000e+00 : f32
    %123 = vector.broadcast %cst_33 : f32 to vector<1x32xf32>
    %124 = arith.subf %123, %117 : vector<1x32xf32>
    %125 = arith.mulf %124, %122 : vector<1x32xf32>
    %126 = arith.mulf %117, %81 : vector<1x32xf32>
    %127 = arith.addf %125, %126 : vector<1x32xf32>
    %cst_34 = arith.constant dense<0.000000e+00> : vector<1x128xf32>
    %128 = tpu.matmul %127, %2, %cst_34 {dimension_numbers = #tpu.dot_dimension_numbers<[1], [0], [0], [1], [0, 0, 1, 1], [], []>} : vector<1x32xf32>, vector<32x128xf32>, vector<1x128xf32> -> vector<1x128xf32>
    %129 = arith.addf %128, %3 : vector<1x128xf32>
    %cst_35 = arith.constant dense<0xFF800000> : vector<1xf32>
    %130 = vector.multi_reduction <maximumf>, %129, %cst_35 [1] : vector<1x128xf32> to vector<1xf32>
    %131 = vector.shape_cast %130 : vector<1xf32> to vector<1x1xf32>
    %132 = vector.broadcast %131 : vector<1x1xf32> to vector<1x128xf32>
    %133 = arith.subf %129, %132 : vector<1x128xf32>
    %134 = math.exp %133 : vector<1x128xf32>
    %cst_36 = arith.constant dense<0.000000e+00> : vector<1xf32>
    %135 = vector.multi_reduction <add>, %134, %cst_36 [1] : vector<1x128xf32> to vector<1xf32>
    %136 = vector.shape_cast %135 : vector<1xf32> to vector<1x1xf32>
    %137 = math.log %136 : vector<1x1xf32>
    %138 = arith.addf %137, %131 : vector<1x1xf32>
    %139 = vector.broadcast %138 : vector<1x1xf32> to vector<1x128xf32>
    %140 = arith.subf %129, %139 : vector<1x128xf32>
    %141 = arith.index_cast %c2_i32 : i32 to index
    %c0_37 = arith.constant 0 : index
    %142 = vector.load %arg8[%141, %c0_37] : memref<8x128xf32, #tpu.memory_space<vmem>>, vector<1x128xf32>
    tpu.vector_store %arg8[%141, %c0_37], %140 {strides = array<i32>} : memref<8x128xf32, #tpu.memory_space<vmem>>, vector<1x128xf32>,
    %c3_i32 = arith.constant 3 : i32
    %143 = arith.index_cast %c3_i32 : i32 to index
    %144 = memref.load %arg1[%143] : memref<8xi32, #tpu.memory_space<smem>>
    %145 = arith.index_cast %144 : i32 to index
    %c0_38 = arith.constant 0 : index
    %146 = vector.load %arg2[%145, %c0_38] : memref<128x32xf32, #tpu.memory_space<vmem>>, vector<1x32xf32>
    %cst_39 = arith.constant 0.000000e+00 : f32
    %147 = vector.broadcast %cst_39 : f32 to vector<1x32xf32>
    %148 = arith.maximumf %146, %147 : vector<1x32xf32>
    %149 = tpu.concatenate %148, %127 in 1 : vector<1x32xf32>, vector<1x32xf32> -> vector<1x64xf32>
    %cst_40 = arith.constant dense<0.000000e+00> : vector<1x128xf32>
    %150 = tpu.matmul %149, %0, %cst_40 {dimension_numbers = #tpu.dot_dimension_numbers<[1], [0], [0], [1], [0, 0, 1, 1], [], []>} : vector<1x64xf32>, vector<64x128xf32>, vector<1x128xf32> -> vector<1x128xf32>
    %151 = arith.addf %150, %1 : vector<1x128xf32>
    %152 = vector.extract_strided_slice %151 {offsets = [0, 0], sizes = [1, 32], strides = [1, 1]} : vector<1x128xf32> to vector<1x32xf32>
    %153 = arith.negf %152 : vector<1x32xf32>
    %154 = math.exp %153 : vector<1x32xf32>
    %cst_41 = arith.constant 1.000000e+00 : f32
    %155 = vector.broadcast %cst_41 : f32 to vector<1x32xf32>
    %156 = arith.addf %155, %154 : vector<1x32xf32>
    %157 = arith.divf %155, %156 : vector<1x32xf32>
    %158 = vector.extract_strided_slice %151 {offsets = [0, 32], sizes = [1, 32], strides = [1, 1]} : vector<1x128xf32> to vector<1x32xf32>
    %159 = arith.negf %158 : vector<1x32xf32>
    %160 = math.exp %159 : vector<1x32xf32>
    %cst_42 = arith.constant 1.000000e+00 : f32
    %161 = vector.broadcast %cst_42 : f32 to vector<1x32xf32>
    %162 = arith.addf %161, %160 : vector<1x32xf32>
    %163 = arith.divf %161, %162 : vector<1x32xf32>
    %164 = vector.extract_strided_slice %151 {offsets = [0, 64], sizes = [1, 32], strides = [1, 1]} : vector<1x128xf32> to vector<1x32xf32>
    %165 = vector.extract_strided_slice %151 {offsets = [0, 96], sizes = [1, 32], strides = [1, 1]} : vector<1x128xf32> to vector<1x32xf32>
    %166 = arith.mulf %157, %165 : vector<1x32xf32>
    %167 = arith.addf %164, %166 : vector<1x32xf32>
    %168 = math.tanh %167 : vector<1x32xf32>
    %cst_43 = arith.constant 1.000000e+00 : f32
    %169 = vector.broadcast %cst_43 : f32 to vector<1x32xf32>
    %170 = arith.subf %169, %163 : vector<1x32xf32>
    %171 = arith.mulf %170, %168 : vector<1x32xf32>
    %172 = arith.mulf %163, %127 : vector<1x32xf32>
    %173 = arith.addf %171, %172 : vector<1x32xf32>
    %cst_44 = arith.constant dense<0.000000e+00> : vector<1x128xf32>
    %174 = tpu.matmul %173, %2, %cst_44 {dimension_numbers = #tpu.dot_dimension_numbers<[1], [0], [0], [1], [0, 0, 1, 1], [], []>} : vector<1x32xf32>, vector<32x128xf32>, vector<1x128xf32> -> vector<1x128xf32>
    %175 = arith.addf %174, %3 : vector<1x128xf32>
    %cst_45 = arith.constant dense<0xFF800000> : vector<1xf32>
    %176 = vector.multi_reduction <maximumf>, %175, %cst_45 [1] : vector<1x128xf32> to vector<1xf32>
    %177 = vector.shape_cast %176 : vector<1xf32> to vector<1x1xf32>
    %178 = vector.broadcast %177 : vector<1x1xf32> to vector<1x128xf32>
    %179 = arith.subf %175, %178 : vector<1x128xf32>
    %180 = math.exp %179 : vector<1x128xf32>
    %cst_46 = arith.constant dense<0.000000e+00> : vector<1xf32>
    %181 = vector.multi_reduction <add>, %180, %cst_46 [1] : vector<1x128xf32> to vector<1xf32>
    %182 = vector.shape_cast %181 : vector<1xf32> to vector<1x1xf32>
    %183 = math.log %182 : vector<1x1xf32>
    %184 = arith.addf %183, %177 : vector<1x1xf32>
    %185 = vector.broadcast %184 : vector<1x1xf32> to vector<1x128xf32>
    %186 = arith.subf %175, %185 : vector<1x128xf32>
    %187 = arith.index_cast %c3_i32 : i32 to index
    %c0_47 = arith.constant 0 : index
    %188 = vector.load %arg8[%187, %c0_47] : memref<8x128xf32, #tpu.memory_space<vmem>>, vector<1x128xf32>
    tpu.vector_store %arg8[%187, %c0_47], %186 {strides = array<i32>} : memref<8x128xf32, #tpu.memory_space<vmem>>, vector<1x128xf32>,
    %c4_i32 = arith.constant 4 : i32
    %189 = arith.index_cast %c4_i32 : i32 to index
    %190 = memref.load %arg1[%189] : memref<8xi32, #tpu.memory_space<smem>>
    %191 = arith.index_cast %190 : i32 to index
    %c0_48 = arith.constant 0 : index
    %192 = vector.load %arg2[%191, %c0_48] : memref<128x32xf32, #tpu.memory_space<vmem>>, vector<1x32xf32>
    %cst_49 = arith.constant 0.000000e+00 : f32
    %193 = vector.broadcast %cst_49 : f32 to vector<1x32xf32>
    %194 = arith.maximumf %192, %193 : vector<1x32xf32>
    %195 = tpu.concatenate %194, %173 in 1 : vector<1x32xf32>, vector<1x32xf32> -> vector<1x64xf32>
    %cst_50 = arith.constant dense<0.000000e+00> : vector<1x128xf32>
    %196 = tpu.matmul %195, %0, %cst_50 {dimension_numbers = #tpu.dot_dimension_numbers<[1], [0], [0], [1], [0, 0, 1, 1], [], []>} : vector<1x64xf32>, vector<64x128xf32>, vector<1x128xf32> -> vector<1x128xf32>
    %197 = arith.addf %196, %1 : vector<1x128xf32>
    %198 = vector.extract_strided_slice %197 {offsets = [0, 0], sizes = [1, 32], strides = [1, 1]} : vector<1x128xf32> to vector<1x32xf32>
    %199 = arith.negf %198 : vector<1x32xf32>
    %200 = math.exp %199 : vector<1x32xf32>
    %cst_51 = arith.constant 1.000000e+00 : f32
    %201 = vector.broadcast %cst_51 : f32 to vector<1x32xf32>
    %202 = arith.addf %201, %200 : vector<1x32xf32>
    %203 = arith.divf %201, %202 : vector<1x32xf32>
    %204 = vector.extract_strided_slice %197 {offsets = [0, 32], sizes = [1, 32], strides = [1, 1]} : vector<1x128xf32> to vector<1x32xf32>
    %205 = arith.negf %204 : vector<1x32xf32>
    %206 = math.exp %205 : vector<1x32xf32>
    %cst_52 = arith.constant 1.000000e+00 : f32
    %207 = vector.broadcast %cst_52 : f32 to vector<1x32xf32>
    %208 = arith.addf %207, %206 : vector<1x32xf32>
    %209 = arith.divf %207, %208 : vector<1x32xf32>
    %210 = vector.extract_strided_slice %197 {offsets = [0, 64], sizes = [1, 32], strides = [1, 1]} : vector<1x128xf32> to vector<1x32xf32>
    %211 = vector.extract_strided_slice %197 {offsets = [0, 96], sizes = [1, 32], strides = [1, 1]} : vector<1x128xf32> to vector<1x32xf32>
    %212 = arith.mulf %203, %211 : vector<1x32xf32>
    %213 = arith.addf %210, %212 : vector<1x32xf32>
    %214 = math.tanh %213 : vector<1x32xf32>
    %cst_53 = arith.constant 1.000000e+00 : f32
    %215 = vector.broadcast %cst_53 : f32 to vector<1x32xf32>
    %216 = arith.subf %215, %209 : vector<1x32xf32>
    %217 = arith.mulf %216, %214 : vector<1x32xf32>
    %218 = arith.mulf %209, %173 : vector<1x32xf32>
    %219 = arith.addf %217, %218 : vector<1x32xf32>
    %cst_54 = arith.constant dense<0.000000e+00> : vector<1x128xf32>
    %220 = tpu.matmul %219, %2, %cst_54 {dimension_numbers = #tpu.dot_dimension_numbers<[1], [0], [0], [1], [0, 0, 1, 1], [], []>} : vector<1x32xf32>, vector<32x128xf32>, vector<1x128xf32> -> vector<1x128xf32>
    %221 = arith.addf %220, %3 : vector<1x128xf32>
    %cst_55 = arith.constant dense<0xFF800000> : vector<1xf32>
    %222 = vector.multi_reduction <maximumf>, %221, %cst_55 [1] : vector<1x128xf32> to vector<1xf32>
    %223 = vector.shape_cast %222 : vector<1xf32> to vector<1x1xf32>
    %224 = vector.broadcast %223 : vector<1x1xf32> to vector<1x128xf32>
    %225 = arith.subf %221, %224 : vector<1x128xf32>
    %226 = math.exp %225 : vector<1x128xf32>
    %cst_56 = arith.constant dense<0.000000e+00> : vector<1xf32>
    %227 = vector.multi_reduction <add>, %226, %cst_56 [1] : vector<1x128xf32> to vector<1xf32>
    %228 = vector.shape_cast %227 : vector<1xf32> to vector<1x1xf32>
    %229 = math.log %228 : vector<1x1xf32>
    %230 = arith.addf %229, %223 : vector<1x1xf32>
    %231 = vector.broadcast %230 : vector<1x1xf32> to vector<1x128xf32>
    %232 = arith.subf %221, %231 : vector<1x128xf32>
    %233 = arith.index_cast %c4_i32 : i32 to index
    %c0_57 = arith.constant 0 : index
    %234 = vector.load %arg8[%233, %c0_57] : memref<8x128xf32, #tpu.memory_space<vmem>>, vector<1x128xf32>
    tpu.vector_store %arg8[%233, %c0_57], %232 {strides = array<i32>} : memref<8x128xf32, #tpu.memory_space<vmem>>, vector<1x128xf32>,
    %c5_i32 = arith.constant 5 : i32
    %235 = arith.index_cast %c5_i32 : i32 to index
    %236 = memref.load %arg1[%235] : memref<8xi32, #tpu.memory_space<smem>>
    %237 = arith.index_cast %236 : i32 to index
    %c0_58 = arith.constant 0 : index
    %238 = vector.load %arg2[%237, %c0_58] : memref<128x32xf32, #tpu.memory_space<vmem>>, vector<1x32xf32>
    %cst_59 = arith.constant 0.000000e+00 : f32
    %239 = vector.broadcast %cst_59 : f32 to vector<1x32xf32>
    %240 = arith.maximumf %238, %239 : vector<1x32xf32>
    %241 = tpu.concatenate %240, %219 in 1 : vector<1x32xf32>, vector<1x32xf32> -> vector<1x64xf32>
    %cst_60 = arith.constant dense<0.000000e+00> : vector<1x128xf32>
    %242 = tpu.matmul %241, %0, %cst_60 {dimension_numbers = #tpu.dot_dimension_numbers<[1], [0], [0], [1], [0, 0, 1, 1], [], []>} : vector<1x64xf32>, vector<64x128xf32>, vector<1x128xf32> -> vector<1x128xf32>
    %243 = arith.addf %242, %1 : vector<1x128xf32>
    %244 = vector.extract_strided_slice %243 {offsets = [0, 0], sizes = [1, 32], strides = [1, 1]} : vector<1x128xf32> to vector<1x32xf32>
    %245 = arith.negf %244 : vector<1x32xf32>
    %246 = math.exp %245 : vector<1x32xf32>
    %cst_61 = arith.constant 1.000000e+00 : f32
    %247 = vector.broadcast %cst_61 : f32 to vector<1x32xf32>
    %248 = arith.addf %247, %246 : vector<1x32xf32>
    %249 = arith.divf %247, %248 : vector<1x32xf32>
    %250 = vector.extract_strided_slice %243 {offsets = [0, 32], sizes = [1, 32], strides = [1, 1]} : vector<1x128xf32> to vector<1x32xf32>
    %251 = arith.negf %250 : vector<1x32xf32>
    %252 = math.exp %251 : vector<1x32xf32>
    %cst_62 = arith.constant 1.000000e+00 : f32
    %253 = vector.broadcast %cst_62 : f32 to vector<1x32xf32>
    %254 = arith.addf %253, %252 : vector<1x32xf32>
    %255 = arith.divf %253, %254 : vector<1x32xf32>
    %256 = vector.extract_strided_slice %243 {offsets = [0, 64], sizes = [1, 32], strides = [1, 1]} : vector<1x128xf32> to vector<1x32xf32>
    %257 = vector.extract_strided_slice %243 {offsets = [0, 96], sizes = [1, 32], strides = [1, 1]} : vector<1x128xf32> to vector<1x32xf32>
    %258 = arith.mulf %249, %257 : vector<1x32xf32>
    %259 = arith.addf %256, %258 : vector<1x32xf32>
    %260 = math.tanh %259 : vector<1x32xf32>
    %cst_63 = arith.constant 1.000000e+00 : f32
    %261 = vector.broadcast %cst_63 : f32 to vector<1x32xf32>
    %262 = arith.subf %261, %255 : vector<1x32xf32>
    %263 = arith.mulf %262, %260 : vector<1x32xf32>
    %264 = arith.mulf %255, %219 : vector<1x32xf32>
    %265 = arith.addf %263, %264 : vector<1x32xf32>
    %cst_64 = arith.constant dense<0.000000e+00> : vector<1x128xf32>
    %266 = tpu.matmul %265, %2, %cst_64 {dimension_numbers = #tpu.dot_dimension_numbers<[1], [0], [0], [1], [0, 0, 1, 1], [], []>} : vector<1x32xf32>, vector<32x128xf32>, vector<1x128xf32> -> vector<1x128xf32>
    %267 = arith.addf %266, %3 : vector<1x128xf32>
    %cst_65 = arith.constant dense<0xFF800000> : vector<1xf32>
    %268 = vector.multi_reduction <maximumf>, %267, %cst_65 [1] : vector<1x128xf32> to vector<1xf32>
    %269 = vector.shape_cast %268 : vector<1xf32> to vector<1x1xf32>
    %270 = vector.broadcast %269 : vector<1x1xf32> to vector<1x128xf32>
    %271 = arith.subf %267, %270 : vector<1x128xf32>
    %272 = math.exp %271 : vector<1x128xf32>
    %cst_66 = arith.constant dense<0.000000e+00> : vector<1xf32>
    %273 = vector.multi_reduction <add>, %272, %cst_66 [1] : vector<1x128xf32> to vector<1xf32>
    %274 = vector.shape_cast %273 : vector<1xf32> to vector<1x1xf32>
    %275 = math.log %274 : vector<1x1xf32>
    %276 = arith.addf %275, %269 : vector<1x1xf32>
    %277 = vector.broadcast %276 : vector<1x1xf32> to vector<1x128xf32>
    %278 = arith.subf %267, %277 : vector<1x128xf32>
    %279 = arith.index_cast %c5_i32 : i32 to index
    %c0_67 = arith.constant 0 : index
    %280 = vector.load %arg8[%279, %c0_67] : memref<8x128xf32, #tpu.memory_space<vmem>>, vector<1x128xf32>
    tpu.vector_store %arg8[%279, %c0_67], %278 {strides = array<i32>} : memref<8x128xf32, #tpu.memory_space<vmem>>, vector<1x128xf32>,
    %c6_i32 = arith.constant 6 : i32
    %281 = arith.index_cast %c6_i32 : i32 to index
    %282 = memref.load %arg1[%281] : memref<8xi32, #tpu.memory_space<smem>>
    %283 = arith.index_cast %282 : i32 to index
    %c0_68 = arith.constant 0 : index
    %284 = vector.load %arg2[%283, %c0_68] : memref<128x32xf32, #tpu.memory_space<vmem>>, vector<1x32xf32>
    %cst_69 = arith.constant 0.000000e+00 : f32
    %285 = vector.broadcast %cst_69 : f32 to vector<1x32xf32>
    %286 = arith.maximumf %284, %285 : vector<1x32xf32>
    %287 = tpu.concatenate %286, %265 in 1 : vector<1x32xf32>, vector<1x32xf32> -> vector<1x64xf32>
    %cst_70 = arith.constant dense<0.000000e+00> : vector<1x128xf32>
    %288 = tpu.matmul %287, %0, %cst_70 {dimension_numbers = #tpu.dot_dimension_numbers<[1], [0], [0], [1], [0, 0, 1, 1], [], []>} : vector<1x64xf32>, vector<64x128xf32>, vector<1x128xf32> -> vector<1x128xf32>
    %289 = arith.addf %288, %1 : vector<1x128xf32>
    %290 = vector.extract_strided_slice %289 {offsets = [0, 0], sizes = [1, 32], strides = [1, 1]} : vector<1x128xf32> to vector<1x32xf32>
    %291 = arith.negf %290 : vector<1x32xf32>
    %292 = math.exp %291 : vector<1x32xf32>
    %cst_71 = arith.constant 1.000000e+00 : f32
    %293 = vector.broadcast %cst_71 : f32 to vector<1x32xf32>
    %294 = arith.addf %293, %292 : vector<1x32xf32>
    %295 = arith.divf %293, %294 : vector<1x32xf32>
    %296 = vector.extract_strided_slice %289 {offsets = [0, 32], sizes = [1, 32], strides = [1, 1]} : vector<1x128xf32> to vector<1x32xf32>
    %297 = arith.negf %296 : vector<1x32xf32>
    %298 = math.exp %297 : vector<1x32xf32>
    %cst_72 = arith.constant 1.000000e+00 : f32
    %299 = vector.broadcast %cst_72 : f32 to vector<1x32xf32>
    %300 = arith.addf %299, %298 : vector<1x32xf32>
    %301 = arith.divf %299, %300 : vector<1x32xf32>
    %302 = vector.extract_strided_slice %289 {offsets = [0, 64], sizes = [1, 32], strides = [1, 1]} : vector<1x128xf32> to vector<1x32xf32>
    %303 = vector.extract_strided_slice %289 {offsets = [0, 96], sizes = [1, 32], strides = [1, 1]} : vector<1x128xf32> to vector<1x32xf32>
    %304 = arith.mulf %295, %303 : vector<1x32xf32>
    %305 = arith.addf %302, %304 : vector<1x32xf32>
    %306 = math.tanh %305 : vector<1x32xf32>
    %cst_73 = arith.constant 1.000000e+00 : f32
    %307 = vector.broadcast %cst_73 : f32 to vector<1x32xf32>
    %308 = arith.subf %307, %301 : vector<1x32xf32>
    %309 = arith.mulf %308, %306 : vector<1x32xf32>
    %310 = arith.mulf %301, %265 : vector<1x32xf32>
    %311 = arith.addf %309, %310 : vector<1x32xf32>
    %cst_74 = arith.constant dense<0.000000e+00> : vector<1x128xf32>
    %312 = tpu.matmul %311, %2, %cst_74 {dimension_numbers = #tpu.dot_dimension_numbers<[1], [0], [0], [1], [0, 0, 1, 1], [], []>} : vector<1x32xf32>, vector<32x128xf32>, vector<1x128xf32> -> vector<1x128xf32>
    %313 = arith.addf %312, %3 : vector<1x128xf32>
    %cst_75 = arith.constant dense<0xFF800000> : vector<1xf32>
    %314 = vector.multi_reduction <maximumf>, %313, %cst_75 [1] : vector<1x128xf32> to vector<1xf32>
    %315 = vector.shape_cast %314 : vector<1xf32> to vector<1x1xf32>
    %316 = vector.broadcast %315 : vector<1x1xf32> to vector<1x128xf32>
    %317 = arith.subf %313, %316 : vector<1x128xf32>
    %318 = math.exp %317 : vector<1x128xf32>
    %cst_76 = arith.constant dense<0.000000e+00> : vector<1xf32>
    %319 = vector.multi_reduction <add>, %318, %cst_76 [1] : vector<1x128xf32> to vector<1xf32>
    %320 = vector.shape_cast %319 : vector<1xf32> to vector<1x1xf32>
    %321 = math.log %320 : vector<1x1xf32>
    %322 = arith.addf %321, %315 : vector<1x1xf32>
    %323 = vector.broadcast %322 : vector<1x1xf32> to vector<1x128xf32>
    %324 = arith.subf %313, %323 : vector<1x128xf32>
    %325 = arith.index_cast %c6_i32 : i32 to index
    %c0_77 = arith.constant 0 : index
    %326 = vector.load %arg8[%325, %c0_77] : memref<8x128xf32, #tpu.memory_space<vmem>>, vector<1x128xf32>
    tpu.vector_store %arg8[%325, %c0_77], %324 {strides = array<i32>} : memref<8x128xf32, #tpu.memory_space<vmem>>, vector<1x128xf32>,
    %c7_i32 = arith.constant 7 : i32
    %327 = arith.index_cast %c7_i32 : i32 to index
    %328 = memref.load %arg1[%327] : memref<8xi32, #tpu.memory_space<smem>>
    %329 = arith.index_cast %328 : i32 to index
    %c0_78 = arith.constant 0 : index
    %330 = vector.load %arg2[%329, %c0_78] : memref<128x32xf32, #tpu.memory_space<vmem>>, vector<1x32xf32>
    %cst_79 = arith.constant 0.000000e+00 : f32
    %331 = vector.broadcast %cst_79 : f32 to vector<1x32xf32>
    %332 = arith.maximumf %330, %331 : vector<1x32xf32>
    %333 = tpu.concatenate %332, %311 in 1 : vector<1x32xf32>, vector<1x32xf32> -> vector<1x64xf32>
    %cst_80 = arith.constant dense<0.000000e+00> : vector<1x128xf32>
    %334 = tpu.matmul %333, %0, %cst_80 {dimension_numbers = #tpu.dot_dimension_numbers<[1], [0], [0], [1], [0, 0, 1, 1], [], []>} : vector<1x64xf32>, vector<64x128xf32>, vector<1x128xf32> -> vector<1x128xf32>
    %335 = arith.addf %334, %1 : vector<1x128xf32>
    %336 = vector.extract_strided_slice %335 {offsets = [0, 0], sizes = [1, 32], strides = [1, 1]} : vector<1x128xf32> to vector<1x32xf32>
    %337 = arith.negf %336 : vector<1x32xf32>
    %338 = math.exp %337 : vector<1x32xf32>
    %cst_81 = arith.constant 1.000000e+00 : f32
    %339 = vector.broadcast %cst_81 : f32 to vector<1x32xf32>
    %340 = arith.addf %339, %338 : vector<1x32xf32>
    %341 = arith.divf %339, %340 : vector<1x32xf32>
    %342 = vector.extract_strided_slice %335 {offsets = [0, 32], sizes = [1, 32], strides = [1, 1]} : vector<1x128xf32> to vector<1x32xf32>
    %343 = arith.negf %342 : vector<1x32xf32>
    %344 = math.exp %343 : vector<1x32xf32>
    %cst_82 = arith.constant 1.000000e+00 : f32
    %345 = vector.broadcast %cst_82 : f32 to vector<1x32xf32>
    %346 = arith.addf %345, %344 : vector<1x32xf32>
    %347 = arith.divf %345, %346 : vector<1x32xf32>
    %348 = vector.extract_strided_slice %335 {offsets = [0, 64], sizes = [1, 32], strides = [1, 1]} : vector<1x128xf32> to vector<1x32xf32>
    %349 = vector.extract_strided_slice %335 {offsets = [0, 96], sizes = [1, 32], strides = [1, 1]} : vector<1x128xf32> to vector<1x32xf32>
    %350 = arith.mulf %341, %349 : vector<1x32xf32>
    %351 = arith.addf %348, %350 : vector<1x32xf32>
    %352 = math.tanh %351 : vector<1x32xf32>
    %cst_83 = arith.constant 1.000000e+00 : f32
    %353 = vector.broadcast %cst_83 : f32 to vector<1x32xf32>
    %354 = arith.subf %353, %347 : vector<1x32xf32>
    %355 = arith.mulf %354, %352 : vector<1x32xf32>
    %356 = arith.mulf %347, %311 : vector<1x32xf32>
    %357 = arith.addf %355, %356 : vector<1x32xf32>
    %cst_84 = arith.constant dense<0.000000e+00> : vector<1x128xf32>
    %358 = tpu.matmul %357, %2, %cst_84 {dimension_numbers = #tpu.dot_dimension_numbers<[1], [0], [0], [1], [0, 0, 1, 1], [], []>} : vector<1x32xf32>, vector<32x128xf32>, vector<1x128xf32> -> vector<1x128xf32>
    %359 = arith.addf %358, %3 : vector<1x128xf32>
    %cst_85 = arith.constant dense<0xFF800000> : vector<1xf32>
    %360 = vector.multi_reduction <maximumf>, %359, %cst_85 [1] : vector<1x128xf32> to vector<1xf32>
    %361 = vector.shape_cast %360 : vector<1xf32> to vector<1x1xf32>
    %362 = vector.broadcast %361 : vector<1x1xf32> to vector<1x128xf32>
    %363 = arith.subf %359, %362 : vector<1x128xf32>
    %364 = math.exp %363 : vector<1x128xf32>
    %cst_86 = arith.constant dense<0.000000e+00> : vector<1xf32>
    %365 = vector.multi_reduction <add>, %364, %cst_86 [1] : vector<1x128xf32> to vector<1xf32>
    %366 = vector.shape_cast %365 : vector<1xf32> to vector<1x1xf32>
    %367 = math.log %366 : vector<1x1xf32>
    %368 = arith.addf %367, %361 : vector<1x1xf32>
    %369 = vector.broadcast %368 : vector<1x1xf32> to vector<1x128xf32>
    %370 = arith.subf %359, %369 : vector<1x128xf32>
    %371 = arith.index_cast %c7_i32 : i32 to index
    %c0_87 = arith.constant 0 : index
    %372 = vector.load %arg8[%371, %c0_87] : memref<8x128xf32, #tpu.memory_space<vmem>>, vector<1x128xf32>
    tpu.vector_store %arg8[%371, %c0_87], %370 {strides = array<i32>} : memref<8x128xf32, #tpu.memory_space<vmem>>, vector<1x128xf32>,
    %c8_i32 = arith.constant 8 : i32
    %c0_88 = arith.constant 0 : index
    %c0_89 = arith.constant 0 : index
    %373 = vector.load %arg9[%c0_88, %c0_89] : memref<1x32xf32, #tpu.memory_space<vmem>>, vector<1x32xf32>
    tpu.vector_store %arg9[%c0_88, %c0_89], %357 {strides = array<i32>} : memref<1x32xf32, #tpu.memory_space<vmem>>, vector<1x32xf32>,
    return
  }
  func.func @transform_0(%arg0: i32, %arg1: memref<8xi32, #tpu.memory_space<smem>>) -> (i32, i32) {
    %c0_i32 = arith.constant 0 : i32
    %c0_i32_0 = arith.constant 0 : i32
    %c0_i32_1 = arith.constant 0 : i32
    return %c0_i32, %c0_i32_0 : i32, i32
  }
  func.func @transform_1(%arg0: i32, %arg1: memref<8xi32, #tpu.memory_space<smem>>) -> (i32, i32) {
    %c0_i32 = arith.constant 0 : i32
    %c0_i32_0 = arith.constant 0 : i32
    %c0_i32_1 = arith.constant 0 : i32
    return %c0_i32, %c0_i32_0 : i32, i32
  }
  func.func @transform_2(%arg0: i32, %arg1: memref<8xi32, #tpu.memory_space<smem>>) -> (i32, i32) {
    %c0_i32 = arith.constant 0 : i32
    %c0_i32_0 = arith.constant 0 : i32
    %c0_i32_1 = arith.constant 0 : i32
    return %c0_i32, %c0_i32_0 : i32, i32
  }
  func.func @transform_3(%arg0: i32, %arg1: memref<8xi32, #tpu.memory_space<smem>>) -> (i32, i32) {
    %c0_i32 = arith.constant 0 : i32
    %c0_i32_0 = arith.constant 0 : i32
    %c0_i32_1 = arith.constant 0 : i32
    return %c0_i32, %c0_i32_0 : i32, i32
  }
  func.func @transform_4(%arg0: i32, %arg1: memref<8xi32, #tpu.memory_space<smem>>) -> (i32, i32) {
    %c0_i32 = arith.constant 0 : i32
    %c0_i32_0 = arith.constant 0 : i32
    %c0_i32_1 = arith.constant 0 : i32
    return %c0_i32, %c0_i32_0 : i32, i32
  }
  func.func @transform_5(%arg0: i32, %arg1: memref<8xi32, #tpu.memory_space<smem>>) -> (i32, i32) {
    %c0_i32 = arith.constant 0 : i32
    %c0_i32_0 = arith.constant 0 : i32
    %c0_i32_1 = arith.constant 0 : i32
    return %c0_i32, %c0_i32_0 : i32, i32
  }
  func.func @transform_6(%arg0: i32, %arg1: memref<8xi32, #tpu.memory_space<smem>>) -> (i32, i32) {
    %c0_i32 = arith.constant 0 : i32
    %c0_i32_0 = arith.constant 0 : i32
    %c0_i32_1 = arith.constant 0 : i32
    return %c0_i32, %c0_i32_0 : i32, i32
  }
  func.func @transform_7(%arg0: i32, %arg1: memref<8xi32, #tpu.memory_space<smem>>) -> (i32, i32) {
    %c0_i32 = arith.constant 0 : i32
    %c0_i32_0 = arith.constant 0 : i32
    %c0_i32_1 = arith.constant 0 : i32
    return %c0_i32, %c0_i32_0 : i32, i32
  }
}

</mosaic_0001>

<bundles_post_ra>
// kernel: tpu_custom_call.1
= control target key start
LH: loop header
LB: loop body
LE: loop exit
PB: predicated region body
PF: predicated region fallthrough
CT: control target
= control target key end

     0   :  { %s2713_s0 = inlined_call_operand.vmem [shape: s32[8], index: 0, kind: input, shape index: {}]   ;;  %s2714_s1 = inlined_call_operand.vmem [shape: f32[128,32], index: 1, kind: input, shape index: {}]   ;;  %s2715_s2 = inlined_call_operand.vmem [shape: f32[1,32], index: 2, kind: input, shape index: {}]   ;;  %s2716_s3 = inlined_call_operand.vmem [shape: f32[64,128], index: 3, kind: input, shape index: {}]   ;;  %s2717_s4 = inlined_call_operand.vmem [shape: f32[1,128], index: 4, kind: input, shape index: {}]   ;;  %s2718_s5 = inlined_call_operand.vmem [shape: f32[32,128], index: 5, kind: input, shape index: {}]   ;;  %s2719_s6 = inlined_call_operand.vmem [shape: f32[1,128], index: 6, kind: input, shape index: {}]   ;;  %s2720_s7 = inlined_call_operand.hbm [shape: f32[8,128], index: 7, kind: output, shape index: {0}]   ;;  %s2721_s8 = inlined_call_operand.hbm [shape: f32[1,32], index: 8, kind: output, shape index: {1}]  }
   0x1   :  { %s14_s29 = sshll.u32 %s2713_s0, 4  ;;  %s15_s29 = int_to_ptr.vmem [resolvable:$true] %s14_s29 }
   0x2   :  { %s2107_s30 = scalar_lea.vmem %s15_s29, 16  ;;  %p2112_p1 = scmp.lt.s32.totalorder %s15_s29, %s15_s29 }
   0x3   :  { %p2108_p0 = scmp.ne.s32.totalorder %s15_s29, %s2107_s30  ;;  %p2113_p2 = scmp.lt.s32.totalorder %s2107_s30, %s2107_s30 }
   0x5   :  { %p2114_p3 = por %p2113_p2, %p2112_p1 }
   0x7   :  { %p2115_p4 = pnand %p2114_p3, %p2108_p0 }
   0x9   :  { %2118 = shalt.err (!%p2115_p4)  }
   0xa   :  { %s2165_s9 = smov [#allocation3]  }
   0xb   :  { %17 = dma.vmem_to_smem %s15_s29, 16, %s2165_s9, [#allocation2] }
   0xc   :  { %2159 = dma.done.wait [#allocation2], 16 }
   0xd   :  { %2160 = vsyncadd [#allocation2], 4294967280 }
   0xe   :  { %19 = sfence }
   0xf   :  { %20 = vsyncpa [#allocation5], 0  ;;  %v1635_v0 = vld [vmem:[%s2715_s2] ss:$0 sm:$0xff]  ;;  %v2227_v1 = vld [vmem:[%s2716_s3 + $0x38] sm:$0xff]  ;;  %s2166_s13 = smov 32  }
  0x10   :  { %58 = vrot.lane.b32.xlu0 %v1635_v0, %s2166_s13  ;;  %v2167_v2 = vmov 0.0   ;;  %v2234_v3 = vld [vmem:[%s2716_s3 + $0x30] sm:$0xff]  ;;  %v2242_v4 = vld [vmem:[%s2716_s3 + $0x28] sm:$0xff]  ;;  %vm2168_vm0 = vmmov 0  }
  0x11   :  { %1779 = vmatprep.subr.mxu0 %v2167_v2  ;;  %1798 = vmatprep.subr.mxu1 %v2167_v2 }
  0x12   :  { %1780 = vmatpush3.msra.mxu0 %v2227_v1  ;;  %1795 = vmatprep.mubr.msk.f32.mxu0 %vm2168_vm0, %v2167_v2 }
  0x13   :  { %1781 = vmatprep.subr.mxu0 %v2167_v2 }
  0x14   :  { %21 = vsyncpa [#allocation7], 0  ;;  %1782 = vmatpush3.msra.mxu0 %v2234_v3  ;;  %1806 = vmatprep.mubr.msk.f32.mxu1 %vm2168_vm0, %v2167_v2  ;;  %v2253_v5 = vld [vmem:[%s2716_s3 + $0x20] sm:$0xff]  ;;  %v2260_v6 = vld [vmem:[%s2716_s3 + $0x18] sm:$0xff]  ;;  %s49_s27 = sld [smem:[#allocation3]]  ;;  %vm61_vm1 = vcmask 261120  }
  0x15   :  { %1783 = vmatprep.subr.mxu0 %v2167_v2  ;;  %v2267_v7 = vld [vmem:[%s2716_s3 + $0x10] sm:$0xff]  ;;  %v2274_v8 = vld [vmem:[%s2716_s3 + $0x8] sm:$0xff]  ;;  %v2281_v9 = vld [vmem:[%s2716_s3] sm:$0xff]  ;;  %vm63_vm2 = vcmask 523264   ;;  %s2169_s10 = smov 64   ;;  %s1639_s17 = sld [smem:[#allocation3 + $0x1]] }
  0x16   :  { %1784 = vmatpush3.msra.mxu0 %v2242_v4  ;;  %v2297_v14 = vld [vmem:[%s2717_s4] sm:$0x1]  ;;  %v2305_v26 = vld [vmem:[%s2718_s5 + $0x18] sm:$0xff]  ;;  %v2310_v27 = vld [vmem:[%s2718_s5 + $0x10] sm:$0xff]  ;;  %s1643_s21 = sld [smem:[#allocation3 + $0x2]]  ;;  %vm237_vm3 = vcmask 1040384  }
  0x17   :  { %1785 = vmatprep.subr.mxu0 %v2167_v2  ;;  %1799 = vmatpush3.msra.mxu1 %v2305_v26  ;;  %v2318_v28 = vld [vmem:[%s2718_s5 + $0x8] sm:$0xff]  ;;  %v2327_v29 = vld [vmem:[%s2718_s5] sm:$0xff]  ;;  %s2170_s5 = smov 96   ;;  %s1647_s25 = sld [smem:[#allocation3 + $0x3]]  ;;  %vm1597_vm4 = vcmask 253952  }
  0x18   :  { %1786 = vmatpush3.msra.mxu0 %v2253_v5  ;;  %1800 = vmatprep.subr.mxu1 %v2167_v2  ;;  %s1651_s29 = sld [smem:[#allocation3 + $0x4]] }
  0x19   :  { %1787 = vmatprep.subr.mxu0 %v2167_v2  ;;  %1801 = vmatpush3.msra.mxu1 %v2310_v27  ;;  %s1655_s4 = sld [smem:[#allocation3 + $0x5]] }
  0x1a   :  { %1788 = vmatpush3.msra.mxu0 %v2260_v6  ;;  %s50_s30 = scalar_lea.vmem %s2714_s1, %s49_s27  ;;  %1802 = vmatprep.subr.mxu1 %v2167_v2  ;;  %s1659_s14 = sld [smem:[#allocation3 + $0x6]] }
  0x1b   :  { %1789 = vmatprep.subr.mxu0 %v2167_v2  ;;  %v51_v10 = vld [vmem:[%s50_s30] sm:$0x1]  ;;  %1803 = vmatpush3.msra.mxu1 %v2318_v28  ;;  %s253_s20 = scalar_lea.vmem %s2714_s1, %s1639_s17  ;;  %s1663_s17 = sld [smem:[#allocation3 + $0x7]] }
  0x1c   :  { %1790 = vmatpush3.msra.mxu0 %v2267_v7  ;;  %v52_v11 = vmax.f32 %v51_v10, 0.0  ;;  %1804 = vmatprep.subr.mxu1 %v2167_v2  ;;  %v254_v37 = vld [vmem:[%s253_s20] sm:$0x1]  ;;  %s445_s24 = scalar_lea.vmem %s2714_s1, %s1643_s21 }
  0x1d   :  { %1791 = vmatprep.subr.mxu0 %v2167_v2  ;;  %1805 = vmatpush3.msra.mxu1 %v2327_v29  ;;  %v255_v38 = vmax.f32 %v254_v37, 0.0  ;;  %v446_v60 = vld [vmem:[%s445_s24] sm:$0x1]  ;;  %s637_s28 = scalar_lea.vmem %s2714_s1, %s1647_s25 }
  0x1e   :  { %1792 = vmatpush3.msra.mxu0 %v2274_v8  ;;  %1809 = vmatprep.subr.mxu1 %v2167_v2  ;;  %v447_v61 = vmax.f32 %v446_v60, 0.0  ;;  %s829_s9 = scalar_lea.vmem %s2714_s1, %s1651_s29 }
  0x1f   :  { %1793 = vmatprep.subr.mxu0 %v2167_v2  ;;  %s1021_s0 = scalar_lea.vmem %s2714_s1, %s1655_s4 }
  0x20   :  { %1794 = vmatpush3.msra.mxu0 %v2281_v9  ;;  %s1213_s16 = scalar_lea.vmem %s2714_s1, %s1659_s14 }
  0x21   :  { %1828 = vmatprep.subr.mxu0 %v2167_v2  ;;  %s1405_s20 = scalar_lea.vmem %s2714_s1, %s1663_s17 }
  0x82   :  { %v59_v12 = vpop.permute.xlu0 %58 }
  0x83   :  { %v62_v13 = vsel %vm61_vm1, %v52_v11, %v59_v12 }
  0x84   :  { %1796 = vmatmul.mubr.msk.f32.vlgmr.msra.gmra.mxu0 %vm63_vm2, %v62_v13 }
  0x85   :  { %1836 = vmatprep.mubr.msk.f32.mxu0 %vm2168_vm0, %v2167_v2  ;;  %1829 = vmatpush3.msra.mxu0 %v2305_v26 }
  0x86   :  { %1830 = vmatprep.subr.mxu0 %v2167_v2 }
  0x87   :  { %1831 = vmatpush3.msra.mxu0 %v2310_v27 }
  0x88   :  { %1832 = vmatprep.subr.mxu0 %v2167_v2 }
  0x89   :  { %1833 = vmatpush3.msra.mxu0 %v2318_v28 }
  0x8a   :  { %1834 = vmatprep.subr.mxu0 %v2167_v2 }
  0x8b   :  { %1835 = vmatpush3.msra.mxu0 %v2327_v29 }
  0x8c   :  { %1839 = vmatprep.subr.mxu0 %v2167_v2 }
 0x144   :  { %v133_v15 = vpop.f32.mrf.mxu0 }
 0x145   :  { %v134_v16 = vadd.f32 %v133_v15, %v2297_v14 }
 0x146   :  { %v1797_v17 = vpop.f32.mrf.mxu0 }
 0x147   :  { %144 = vrot.lane.b32.xlu0 %v134_v16, %s2166_s13  ;;  %v1637_v18 = vmul.f32 -1.442695, %v134_v16 }
 0x149   :  { %2027 = vpow2.f32 %v1637_v18 }
 0x156   :  { %v2028_v19 = vpop.eup %2027 }
 0x157   :  { %v140_v20 = vadd.f32 1.0, %v2028_v19 }
 0x159   :  { %2029 = vrcp.f32 %v140_v20 }
 0x166   :  { %v2030_v21 = vpop.eup %2029 }
 0x167   :  { %v154_v31 = vsub.f32 1.0, %v2030_v21  ;;  %v160_v33 = vmul.f32 %v2030_v21, %v59_v12 }
 0x1b9   :  { %v145_v22 = vpop.permute.xlu0 %144 }
 0x1ba   :  { %v147_v23 = vmul.f32 %v2030_v21, %v145_v22 }
 0x1bc   :  { %149 = vrot.lane.b32.xlu1 %v147_v23, %s2169_s10 }
 0x22e   :  { %v150_v24 = vpop.permute.xlu1 %149 }
 0x22f   :  { %v152_v25 = vadd.f32 %v150_v24, %v134_v16 }
 0x231   :  { %2031 = vtanh.f32 %v152_v25 }
 0x23e   :  { %v2032_v30 = vpop.eup %2031 }
 0x23f   :  { %156 = vrot.lane.b32.xlu1 %v2032_v30, %s2170_s5 }
 0x2b1   :  { %v157_v32 = vpop.permute.xlu1 %156 }
 0x2b2   :  { %v159_v34 = vmul.f32 %v157_v32, %v154_v31 }
 0x2b4   :  { %v161_v35 = vadd.f32 %v160_v33, %v159_v34  ;;  %v638_v33 = vld [vmem:[%s637_s28] sm:$0x1] }
 0x2b5   :  { %v639_v34 = vmax.f32 %v638_v33, 0.0 }
 0x2b6   :  { %163 = vrot.lane.b32.xlu0 %v161_v35, %s2170_s5  ;;  %v256_v39 = vsel %vm61_vm1, %v255_v38, %v161_v35 }
 0x328   :  { %v164_v36 = vpop.permute.xlu0 %163 }
 0x329   :  { %1807 = vmatmul.mubr.msk.f32.vlgmr.msra.gmra.mxu1 %vm61_vm1, %v164_v36 }
 0x32a   :  { %1810 = vmatpush3.msra.mxu1 %v2227_v1  ;;  %1825 = vmatprep.mubr.msk.f32.mxu1 %vm2168_vm0, %v2167_v2 }
 0x32b   :  { %1811 = vmatprep.subr.mxu1 %v2167_v2 }
 0x32c   :  { %1812 = vmatpush3.msra.mxu1 %v2234_v3 }
 0x32d   :  { %1813 = vmatprep.subr.mxu1 %v2167_v2 }
 0x32e   :  { %1814 = vmatpush3.msra.mxu1 %v2242_v4 }
 0x32f   :  { %1815 = vmatprep.subr.mxu1 %v2167_v2 }
 0x330   :  { %1816 = vmatpush3.msra.mxu1 %v2253_v5 }
 0x331   :  { %1817 = vmatprep.subr.mxu1 %v2167_v2 }
 0x332   :  { %1818 = vmatpush3.msra.mxu1 %v2260_v6 }
 0x333   :  { %1819 = vmatprep.subr.mxu1 %v2167_v2 }
 0x334   :  { %1820 = vmatpush3.msra.mxu1 %v2267_v7 }
 0x335   :  { %1821 = vmatprep.subr.mxu1 %v2167_v2 }
 0x336   :  { %1822 = vmatpush3.msra.mxu1 %v2274_v8 }
 0x337   :  { %1823 = vmatprep.subr.mxu1 %v2167_v2 }
 0x338   :  { %1824 = vmatpush3.msra.mxu1 %v2281_v9 }
 0x339   :  { %1826 = vmatmul.mubr.msk.f32.vlgmr.msra.gmra.mxu1 %vm63_vm2, %v256_v39  ;;  %1858 = vmatprep.subr.mxu1 %v2167_v2 }
 0x33a   :  { %1859 = vmatpush3.msra.mxu1 %v2305_v26  ;;  %1866 = vmatprep.mubr.msk.f32.mxu1 %vm2168_vm0, %v2167_v2 }
 0x33b   :  { %1860 = vmatprep.subr.mxu1 %v2167_v2 }
 0x33c   :  { %1861 = vmatpush3.msra.mxu1 %v2310_v27 }
 0x33d   :  { %1862 = vmatprep.subr.mxu1 %v2167_v2 }
 0x33e   :  { %1863 = vmatpush3.msra.mxu1 %v2318_v28 }
 0x33f   :  { %1864 = vmatprep.subr.mxu1 %v2167_v2 }
 0x340   :  { %1865 = vmatpush3.msra.mxu1 %v2327_v29 }
 0x341   :  { %1869 = vmatprep.subr.mxu1 %v2167_v2 }
 0x3e9   :  { %v2374_v40 = vpop.f32.mrf.mxu1 }
 0x3eb   :  { %v1808_v41 = vpop.f32.mrf.mxu1 }
 0x3f9   :  { %v326_v42 = vpop.f32.mrf.mxu1 }
 0x3fa   :  { %v327_v43 = vadd.f32 %v326_v42, %v2297_v14 }
 0x3fb   :  { %v1827_v44 = vpop.f32.mrf.mxu1 }
 0x3fc   :  { %337 = vrot.lane.b32.xlu1 %v327_v43, %s2166_s13  ;;  %v1641_v45 = vmul.f32 -1.442695, %v327_v43 }
 0x3fe   :  { %2033 = vpow2.f32 %v1641_v45 }
 0x40b   :  { %v2034_v46 = vpop.eup %2033 }
 0x40c   :  { %v333_v47 = vadd.f32 1.0, %v2034_v46 }
 0x40e   :  { %2035 = vrcp.f32 %v333_v47 }
 0x41b   :  { %v2036_v48 = vpop.eup %2035 }
 0x41c   :  { %v347_v54 = vsub.f32 1.0, %v2036_v48  ;;  %v353_v56 = vmul.f32 %v2036_v48, %v161_v35 }
 0x46e   :  { %v338_v49 = vpop.permute.xlu1 %337 }
 0x46f   :  { %v340_v50 = vmul.f32 %v2036_v48, %v338_v49 }
 0x471   :  { %342 = vrot.lane.b32.xlu0 %v340_v50, %s2169_s10 }
 0x4e3   :  { %v343_v51 = vpop.permute.xlu0 %342 }
 0x4e4   :  { %v345_v52 = vadd.f32 %v343_v51, %v327_v43 }
 0x4e6   :  { %2037 = vtanh.f32 %v345_v52 }
 0x4f3   :  { %v2038_v53 = vpop.eup %2037 }
 0x4f4   :  { %349 = vrot.lane.b32.xlu1 %v2038_v53, %s2170_s5 }
 0x566   :  { %v350_v55 = vpop.permute.xlu1 %349 }
 0x567   :  { %v352_v57 = vmul.f32 %v350_v55, %v347_v54 }
 0x569   :  { %v354_v58 = vadd.f32 %v353_v56, %v352_v57  ;;  %v830_v57 = vld [vmem:[%s829_s9] sm:$0x1] }
 0x56b   :  { %356 = vrot.lane.b32.xlu0 %v354_v58, %s2170_s5  ;;  %v448_v62 = vsel %vm61_vm1, %v447_v61, %v354_v58 }
 0x5dd   :  { %v357_v59 = vpop.permute.xlu0 %356 }
 0x5de   :  { %1837 = vmatmul.mubr.msk.f32.vlgmr.msra.gmra.mxu0 %vm61_vm1, %v357_v59 }
 0x5df   :  { %1840 = vmatpush3.msra.mxu0 %v2227_v1  ;;  %1855 = vmatprep.mubr.msk.f32.mxu0 %vm2168_vm0, %v2167_v2 }
 0x5e0   :  { %1841 = vmatprep.subr.mxu0 %v2167_v2 }
 0x5e1   :  { %1842 = vmatpush3.msra.mxu0 %v2234_v3 }
 0x5e2   :  { %1843 = vmatprep.subr.mxu0 %v2167_v2 }
 0x5e3   :  { %1844 = vmatpush3.msra.mxu0 %v2242_v4 }
 0x5e4   :  { %1845 = vmatprep.subr.mxu0 %v2167_v2 }
 0x5e5   :  { %1846 = vmatpush3.msra.mxu0 %v2253_v5 }
 0x5e6   :  { %1847 = vmatprep.subr.mxu0 %v2167_v2 }
 0x5e7   :  { %1848 = vmatpush3.msra.mxu0 %v2260_v6 }
 0x5e8   :  { %1849 = vmatprep.subr.mxu0 %v2167_v2 }
 0x5e9   :  { %1850 = vmatpush3.msra.mxu0 %v2267_v7 }
 0x5ea   :  { %1851 = vmatprep.subr.mxu0 %v2167_v2 }
 0x5eb   :  { %1852 = vmatpush3.msra.mxu0 %v2274_v8 }
 0x5ec   :  { %1853 = vmatprep.subr.mxu0 %v2167_v2 }
 0x5ed   :  { %1854 = vmatpush3.msra.mxu0 %v2281_v9 }
 0x5ee   :  { %1856 = vmatmul.mubr.msk.f32.vlgmr.msra.gmra.mxu0 %vm63_vm2, %v448_v62  ;;  %1888 = vmatprep.subr.mxu0 %v2167_v2 }
 0x5ef   :  { %1889 = vmatpush3.msra.mxu0 %v2305_v26  ;;  %1896 = vmatprep.mubr.msk.f32.mxu0 %vm2168_vm0, %v2167_v2 }
 0x5f0   :  { %1890 = vmatprep.subr.mxu0 %v2167_v2 }
 0x5f1   :  { %1891 = vmatpush3.msra.mxu0 %v2310_v27 }
 0x5f2   :  { %1892 = vmatprep.subr.mxu0 %v2167_v2 }
 0x5f3   :  { %1893 = vmatpush3.msra.mxu0 %v2318_v28 }
 0x5f4   :  { %1894 = vmatprep.subr.mxu0 %v2167_v2 }
 0x5f5   :  { %1895 = vmatpush3.msra.mxu0 %v2327_v29 }
 0x5f6   :  { %1899 = vmatprep.subr.mxu0 %v2167_v2 }
 0x69e   :  { %v2415_v63 = vpop.f32.mrf.mxu0 }
 0x6a0   :  { %v1838_v0 = vpop.f32.mrf.mxu0 }
 0x6ae   :  { %v518_v10 = vpop.f32.mrf.mxu0 }
 0x6af   :  { %v519_v11 = vadd.f32 %v518_v10, %v2297_v14 }
 0x6b0   :  { %v1857_v12 = vpop.f32.mrf.mxu0 }
 0x6b1   :  { %529 = vrot.lane.b32.xlu1 %v519_v11, %s2166_s13  ;;  %v1645_v13 = vmul.f32 -1.442695, %v519_v11 }
 0x6b3   :  { %2039 = vpow2.f32 %v1645_v13 }
 0x6c0   :  { %v2040_v15 = vpop.eup %2039 }
 0x6c1   :  { %v525_v16 = vadd.f32 1.0, %v2040_v15 }
 0x6c3   :  { %2041 = vrcp.f32 %v525_v16 }
 0x6d0   :  { %v2042_v17 = vpop.eup %2041 }
 0x6d1   :  { %v539_v23 = vsub.f32 1.0, %v2042_v17  ;;  %v545_v25 = vmul.f32 %v2042_v17, %v354_v58  ;;  %v831_v58 = vmax.f32 %v830_v57, 0.0 }
 0x723   :  { %v530_v18 = vpop.permute.xlu1 %529 }
 0x724   :  { %v532_v19 = vmul.f32 %v2042_v17, %v530_v18 }
 0x726   :  { %534 = vrot.lane.b32.xlu0 %v532_v19, %s2169_s10 }
 0x798   :  { %v535_v20 = vpop.permute.xlu0 %534 }
 0x799   :  { %v537_v21 = vadd.f32 %v535_v20, %v519_v11 }
 0x79b   :  { %2043 = vtanh.f32 %v537_v21 }
 0x7a8   :  { %v2044_v22 = vpop.eup %2043 }
 0x7a9   :  { %541 = vrot.lane.b32.xlu1 %v2044_v22, %s2170_s5 }
 0x81b   :  { %v542_v24 = vpop.permute.xlu1 %541 }
 0x81c   :  { %v544_v30 = vmul.f32 %v542_v24, %v539_v23 }
 0x81e   :  { %v546_v31 = vadd.f32 %v545_v25, %v544_v30 }
 0x820   :  { %548 = vrot.lane.b32.xlu0 %v546_v31, %s2170_s5  ;;  %v640_v35 = vsel %vm61_vm1, %v639_v34, %v546_v31 }
 0x892   :  { %v549_v32 = vpop.permute.xlu0 %548 }
 0x893   :  { %1867 = vmatmul.mubr.msk.f32.vlgmr.msra.gmra.mxu1 %vm61_vm1, %v549_v32 }
 0x894   :  { %1870 = vmatpush3.msra.mxu1 %v2227_v1  ;;  %1885 = vmatprep.mubr.msk.f32.mxu1 %vm2168_vm0, %v2167_v2 }
 0x895   :  { %1871 = vmatprep.subr.mxu1 %v2167_v2 }
 0x896   :  { %1872 = vmatpush3.msra.mxu1 %v2234_v3 }
 0x897   :  { %1873 = vmatprep.subr.mxu1 %v2167_v2 }
 0x898   :  { %1874 = vmatpush3.msra.mxu1 %v2242_v4 }
 0x899   :  { %1875 = vmatprep.subr.mxu1 %v2167_v2 }
 0x89a   :  { %1876 = vmatpush3.msra.mxu1 %v2253_v5 }
 0x89b   :  { %1877 = vmatprep.subr.mxu1 %v2167_v2 }
 0x89c   :  { %1878 = vmatpush3.msra.mxu1 %v2260_v6 }
 0x89d   :  { %1879 = vmatprep.subr.mxu1 %v2167_v2 }
 0x89e   :  { %1880 = vmatpush3.msra.mxu1 %v2267_v7 }
 0x89f   :  { %1881 = vmatprep.subr.mxu1 %v2167_v2 }
 0x8a0   :  { %1882 = vmatpush3.msra.mxu1 %v2274_v8 }
 0x8a1   :  { %1883 = vmatprep.subr.mxu1 %v2167_v2 }
 0x8a2   :  { %1884 = vmatpush3.msra.mxu1 %v2281_v9 }
 0x8a3   :  { %1886 = vmatmul.mubr.msk.f32.vlgmr.msra.gmra.mxu1 %vm63_vm2, %v640_v35  ;;  %1918 = vmatprep.subr.mxu1 %v2167_v2 }
 0x8a4   :  { %1919 = vmatpush3.msra.mxu1 %v2305_v26  ;;  %1926 = vmatprep.mubr.msk.f32.mxu1 %vm2168_vm0, %v2167_v2 }
 0x8a5   :  { %1920 = vmatprep.subr.mxu1 %v2167_v2 }
 0x8a6   :  { %1921 = vmatpush3.msra.mxu1 %v2310_v27 }
 0x8a7   :  { %1922 = vmatprep.subr.mxu1 %v2167_v2 }
 0x8a8   :  { %1923 = vmatpush3.msra.mxu1 %v2318_v28 }
 0x8a9   :  { %1924 = vmatprep.subr.mxu1 %v2167_v2 }
 0x8aa   :  { %1925 = vmatpush3.msra.mxu1 %v2327_v29 }
 0x8ab   :  { %1929 = vmatprep.subr.mxu1 %v2167_v2 }
 0x953   :  { %v2456_v36 = vpop.f32.mrf.mxu1 }
 0x955   :  { %v1868_v37 = vpop.f32.mrf.mxu1 }
 0x963   :  { %v710_v38 = vpop.f32.mrf.mxu1 }
 0x964   :  { %v711_v39 = vadd.f32 %v710_v38, %v2297_v14 }
 0x965   :  { %v1887_v41 = vpop.f32.mrf.mxu1 }
 0x966   :  { %721 = vrot.lane.b32.xlu1 %v711_v39, %s2166_s13  ;;  %v1649_v42 = vmul.f32 -1.442695, %v711_v39 }
 0x968   :  { %2045 = vpow2.f32 %v1649_v42 }
 0x975   :  { %v2046_v43 = vpop.eup %2045 }
 0x976   :  { %v717_v44 = vadd.f32 1.0, %v2046_v43 }
 0x978   :  { %2047 = vrcp.f32 %v717_v44 }
 0x985   :  { %v2048_v45 = vpop.eup %2047 }
 0x986   :  { %v731_v51 = vsub.f32 1.0, %v2048_v45  ;;  %v737_v53 = vmul.f32 %v2048_v45, %v546_v31  ;;  %v1022_v31 = vld [vmem:[%s1021_s0] sm:$0x1] }
 0x987   :  { %v1023_v32 = vmax.f32 %v1022_v31, 0.0 }
 0x9d8   :  { %v722_v46 = vpop.permute.xlu1 %721 }
 0x9d9   :  { %v724_v47 = vmul.f32 %v2048_v45, %v722_v46 }
 0x9db   :  { %726 = vrot.lane.b32.xlu0 %v724_v47, %s2169_s10 }
 0xa4d   :  { %v727_v48 = vpop.permute.xlu0 %726 }
 0xa4e   :  { %v729_v49 = vadd.f32 %v727_v48, %v711_v39 }
 0xa50   :  { %2049 = vtanh.f32 %v729_v49 }
 0xa5d   :  { %v2050_v50 = vpop.eup %2049 }
 0xa5e   :  { %733 = vrot.lane.b32.xlu1 %v2050_v50, %s2170_s5 }
 0xad0   :  { %v734_v52 = vpop.permute.xlu1 %733 }
 0xad1   :  { %v736_v54 = vmul.f32 %v734_v52, %v731_v51 }
 0xad3   :  { %v738_v55 = vadd.f32 %v737_v53, %v736_v54 }
 0xad5   :  { %740 = vrot.lane.b32.xlu0 %v738_v55, %s2170_s5  ;;  %v832_v59 = vsel %vm61_vm1, %v831_v58, %v738_v55 }
 0xb47   :  { %v741_v56 = vpop.permute.xlu0 %740 }
 0xb48   :  { %1897 = vmatmul.mubr.msk.f32.vlgmr.msra.gmra.mxu0 %vm61_vm1, %v741_v56  ;;  %v1214_v56 = vld [vmem:[%s1213_s16] sm:$0x1] }
 0xb49   :  { %1900 = vmatpush3.msra.mxu0 %v2227_v1  ;;  %1915 = vmatprep.mubr.msk.f32.mxu0 %vm2168_vm0, %v2167_v2  ;;  %v1215_v57 = vmax.f32 %v1214_v56, 0.0 }
 0xb4a   :  { %1901 = vmatprep.subr.mxu0 %v2167_v2 }
 0xb4b   :  { %1902 = vmatpush3.msra.mxu0 %v2234_v3 }
 0xb4c   :  { %1903 = vmatprep.subr.mxu0 %v2167_v2 }
 0xb4d   :  { %1904 = vmatpush3.msra.mxu0 %v2242_v4 }
 0xb4e   :  { %1905 = vmatprep.subr.mxu0 %v2167_v2 }
 0xb4f   :  { %1906 = vmatpush3.msra.mxu0 %v2253_v5 }
 0xb50   :  { %1907 = vmatprep.subr.mxu0 %v2167_v2 }
 0xb51   :  { %1908 = vmatpush3.msra.mxu0 %v2260_v6 }
 0xb52   :  { %1909 = vmatprep.subr.mxu0 %v2167_v2 }
 0xb53   :  { %1910 = vmatpush3.msra.mxu0 %v2267_v7 }
 0xb54   :  { %1911 = vmatprep.subr.mxu0 %v2167_v2 }
 0xb55   :  { %1912 = vmatpush3.msra.mxu0 %v2274_v8 }
 0xb56   :  { %1913 = vmatprep.subr.mxu0 %v2167_v2 }
 0xb57   :  { %1914 = vmatpush3.msra.mxu0 %v2281_v9 }
 0xb58   :  { %1916 = vmatmul.mubr.msk.f32.vlgmr.msra.gmra.mxu0 %vm63_vm2, %v832_v59  ;;  %1948 = vmatprep.subr.mxu0 %v2167_v2 }
 0xb59   :  { %1949 = vmatpush3.msra.mxu0 %v2305_v26  ;;  %1956 = vmatprep.mubr.msk.f32.mxu0 %vm2168_vm0, %v2167_v2 }
 0xb5a   :  { %1950 = vmatprep.subr.mxu0 %v2167_v2 }
 0xb5b   :  { %1951 = vmatpush3.msra.mxu0 %v2310_v27 }
 0xb5c   :  { %1952 = vmatprep.subr.mxu0 %v2167_v2 }
 0xb5d   :  { %1953 = vmatpush3.msra.mxu0 %v2318_v28 }
 0xb5e   :  { %1954 = vmatprep.subr.mxu0 %v2167_v2 }
 0xb5f   :  { %1955 = vmatpush3.msra.mxu0 %v2327_v29 }
 0xb60   :  { %1959 = vmatprep.subr.mxu0 %v2167_v2 }
 0xc08   :  { %v2497_v60 = vpop.f32.mrf.mxu0 }
 0xc0a   :  { %v1898_v61 = vpop.f32.mrf.mxu0 }
 0xc18   :  { %v902_v62 = vpop.f32.mrf.mxu0 }
 0xc19   :  { %v903_v0 = vadd.f32 %v902_v62, %v2297_v14 }
 0xc1a   :  { %v1917_v10 = vpop.f32.mrf.mxu0 }
 0xc1b   :  { %913 = vrot.lane.b32.xlu1 %v903_v0, %s2166_s13  ;;  %v1653_v11 = vmul.f32 -1.442695, %v903_v0 }
 0xc1d   :  { %2051 = vpow2.f32 %v1653_v11 }
 0xc2a   :  { %v2052_v12 = vpop.eup %2051 }
 0xc2b   :  { %v909_v13 = vadd.f32 1.0, %v2052_v12 }
 0xc2d   :  { %2053 = vrcp.f32 %v909_v13 }
 0xc3a   :  { %v2054_v15 = vpop.eup %2053 }
 0xc3b   :  { %v923_v21 = vsub.f32 1.0, %v2054_v15  ;;  %v929_v23 = vmul.f32 %v2054_v15, %v738_v55 }
 0xc8d   :  { %v914_v16 = vpop.permute.xlu1 %913 }
 0xc8e   :  { %v916_v17 = vmul.f32 %v2054_v15, %v914_v16 }
 0xc90   :  { %918 = vrot.lane.b32.xlu0 %v916_v17, %s2169_s10 }
 0xd02   :  { %v919_v18 = vpop.permute.xlu0 %918 }
 0xd03   :  { %v921_v19 = vadd.f32 %v919_v18, %v903_v0 }
 0xd05   :  { %2055 = vtanh.f32 %v921_v19 }
 0xd12   :  { %v2056_v20 = vpop.eup %2055 }
 0xd13   :  { %925 = vrot.lane.b32.xlu1 %v2056_v20, %s2170_s5 }
 0xd85   :  { %v926_v22 = vpop.permute.xlu1 %925 }
 0xd86   :  { %v928_v24 = vmul.f32 %v926_v22, %v923_v21 }
 0xd88   :  { %v930_v25 = vadd.f32 %v929_v23, %v928_v24 }
 0xd8a   :  { %932 = vrot.lane.b32.xlu0 %v930_v25, %s2170_s5  ;;  %v1024_v33 = vsel %vm61_vm1, %v1023_v32, %v930_v25 }
 0xdfc   :  { %v933_v30 = vpop.permute.xlu0 %932 }
 0xdfd   :  { %1927 = vmatmul.mubr.msk.f32.vlgmr.msra.gmra.mxu1 %vm61_vm1, %v933_v30 }
 0xdfe   :  { %1930 = vmatpush3.msra.mxu1 %v2227_v1  ;;  %1945 = vmatprep.mubr.msk.f32.mxu1 %vm2168_vm0, %v2167_v2 }
 0xdff   :  { %1931 = vmatprep.subr.mxu1 %v2167_v2 }
 0xe00   :  { %1932 = vmatpush3.msra.mxu1 %v2234_v3 }
 0xe01   :  { %1933 = vmatprep.subr.mxu1 %v2167_v2 }
 0xe02   :  { %1934 = vmatpush3.msra.mxu1 %v2242_v4 }
 0xe03   :  { %1935 = vmatprep.subr.mxu1 %v2167_v2 }
 0xe04   :  { %1936 = vmatpush3.msra.mxu1 %v2253_v5 }
 0xe05   :  { %1937 = vmatprep.subr.mxu1 %v2167_v2 }
 0xe06   :  { %1938 = vmatpush3.msra.mxu1 %v2260_v6 }
 0xe07   :  { %1939 = vmatprep.subr.mxu1 %v2167_v2 }
 0xe08   :  { %1940 = vmatpush3.msra.mxu1 %v2267_v7 }
 0xe09   :  { %1941 = vmatprep.subr.mxu1 %v2167_v2 }
 0xe0a   :  { %1942 = vmatpush3.msra.mxu1 %v2274_v8 }
 0xe0b   :  { %1943 = vmatprep.subr.mxu1 %v2167_v2 }
 0xe0c   :  { %1944 = vmatpush3.msra.mxu1 %v2281_v9 }
 0xe0d   :  { %1946 = vmatmul.mubr.msk.f32.vlgmr.msra.gmra.mxu1 %vm63_vm2, %v1024_v33  ;;  %1978 = vmatprep.subr.mxu1 %v2167_v2 }
 0xe0e   :  { %1979 = vmatpush3.msra.mxu1 %v2305_v26  ;;  %1986 = vmatprep.mubr.msk.f32.mxu1 %vm2168_vm0, %v2167_v2 }
 0xe0f   :  { %1980 = vmatprep.subr.mxu1 %v2167_v2 }
 0xe10   :  { %1981 = vmatpush3.msra.mxu1 %v2310_v27 }
 0xe11   :  { %1982 = vmatprep.subr.mxu1 %v2167_v2 }
 0xe12   :  { %1983 = vmatpush3.msra.mxu1 %v2318_v28 }
 0xe13   :  { %1984 = vmatprep.subr.mxu1 %v2167_v2 }
 0xe14   :  { %1985 = vmatpush3.msra.mxu1 %v2327_v29 }
 0xe15   :  { %1989 = vmatprep.subr.mxu1 %v2167_v2 }
 0xebd   :  { %v2538_v34 = vpop.f32.mrf.mxu1 }
 0xebf   :  { %v1928_v35 = vpop.f32.mrf.mxu1 }
 0xecd   :  { %v1094_v37 = vpop.f32.mrf.mxu1 }
 0xece   :  { %v1095_v38 = vadd.f32 %v1094_v37, %v2297_v14 }
 0xecf   :  { %v1947_v39 = vpop.f32.mrf.mxu1 }
 0xed0   :  { %1105 = vrot.lane.b32.xlu1 %v1095_v38, %s2166_s13  ;;  %v1657_v41 = vmul.f32 -1.442695, %v1095_v38 }
 0xed2   :  { %2057 = vpow2.f32 %v1657_v41 }
 0xedf   :  { %v2058_v42 = vpop.eup %2057 }
 0xee0   :  { %v1101_v43 = vadd.f32 1.0, %v2058_v42 }
 0xee2   :  { %2059 = vrcp.f32 %v1101_v43 }
 0xeef   :  { %v2060_v44 = vpop.eup %2059 }
 0xef0   :  { %v1115_v50 = vsub.f32 1.0, %v2060_v44  ;;  %v1121_v52 = vmul.f32 %v2060_v44, %v930_v25 }
 0xf42   :  { %v1106_v45 = vpop.permute.xlu1 %1105 }
 0xf43   :  { %v1108_v46 = vmul.f32 %v2060_v44, %v1106_v45 }
 0xf45   :  { %1110 = vrot.lane.b32.xlu0 %v1108_v46, %s2169_s10 }
 0xfb7   :  { %v1111_v47 = vpop.permute.xlu0 %1110 }
 0xfb8   :  { %v1113_v48 = vadd.f32 %v1111_v47, %v1095_v38 }
 0xfba   :  { %2061 = vtanh.f32 %v1113_v48 }
 0xfc7   :  { %v2062_v49 = vpop.eup %2061 }
 0xfc8   :  { %1117 = vrot.lane.b32.xlu1 %v2062_v49, %s2170_s5 }
0x103a   :  { %v1118_v51 = vpop.permute.xlu1 %1117 }
0x103b   :  { %v1120_v53 = vmul.f32 %v1118_v51, %v1115_v50 }
0x103d   :  { %v1122_v54 = vadd.f32 %v1121_v52, %v1120_v53 }
0x103f   :  { %1124 = vrot.lane.b32.xlu0 %v1122_v54, %s2170_s5  ;;  %v1216_v58 = vsel %vm61_vm1, %v1215_v57, %v1122_v54 }
0x10b1   :  { %v1125_v55 = vpop.permute.xlu0 %1124 }
0x10b2   :  { %1957 = vmatmul.mubr.msk.f32.vlgmr.msra.gmra.mxu0 %vm61_vm1, %v1125_v55 }
0x10b3   :  { %1960 = vmatpush3.msra.mxu0 %v2227_v1  ;;  %1975 = vmatprep.mubr.msk.f32.mxu0 %vm2168_vm0, %v2167_v2 }
0x10b4   :  { %1961 = vmatprep.subr.mxu0 %v2167_v2 }
0x10b5   :  { %1962 = vmatpush3.msra.mxu0 %v2234_v3 }
0x10b6   :  { %1963 = vmatprep.subr.mxu0 %v2167_v2 }
0x10b7   :  { %1964 = vmatpush3.msra.mxu0 %v2242_v4 }
0x10b8   :  { %1965 = vmatprep.subr.mxu0 %v2167_v2 }
0x10b9   :  { %1966 = vmatpush3.msra.mxu0 %v2253_v5 }
0x10ba   :  { %1967 = vmatprep.subr.mxu0 %v2167_v2 }
0x10bb   :  { %1968 = vmatpush3.msra.mxu0 %v2260_v6 }
0x10bc   :  { %1969 = vmatprep.subr.mxu0 %v2167_v2 }
0x10bd   :  { %1970 = vmatpush3.msra.mxu0 %v2267_v7 }
0x10be   :  { %1971 = vmatprep.subr.mxu0 %v2167_v2 }
0x10bf   :  { %1972 = vmatpush3.msra.mxu0 %v2274_v8 }
0x10c0   :  { %1973 = vmatprep.subr.mxu0 %v2167_v2 }
0x10c1   :  { %1974 = vmatpush3.msra.mxu0 %v2281_v9 }
0x10c2   :  { %1976 = vmatmul.mubr.msk.f32.vlgmr.msra.gmra.mxu0 %vm63_vm2, %v1216_v58  ;;  %2008 = vmatprep.subr.mxu0 %v2167_v2 }
0x10c3   :  { %2009 = vmatpush3.msra.mxu0 %v2305_v26  ;;  %2016 = vmatprep.mubr.msk.f32.mxu0 %vm2168_vm0, %v2167_v2 }
0x10c4   :  { %2010 = vmatprep.subr.mxu0 %v2167_v2 }
0x10c5   :  { %2011 = vmatpush3.msra.mxu0 %v2310_v27 }
0x10c6   :  { %2012 = vmatprep.subr.mxu0 %v2167_v2 }
0x10c7   :  { %2013 = vmatpush3.msra.mxu0 %v2318_v28 }
0x10c8   :  { %2014 = vmatprep.subr.mxu0 %v2167_v2 }
0x10c9   :  { %2015 = vmatpush3.msra.mxu0 %v2327_v29 }
0x1172   :  { %v2578_v59 = vpop.f32.mrf.mxu0 }
0x1174   :  { %v1958_v61 = vpop.f32.mrf.mxu0 }
0x1182   :  { %v1286_v62 = vpop.f32.mrf.mxu0 }
0x1183   :  { %v1287_v26 = vadd.f32 %v1286_v62, %v2297_v14 }
0x1184   :  { %v1977_v0 = vpop.f32.mrf.mxu0 }
0x1185   :  { %1297 = vrot.lane.b32.xlu1 %v1287_v26, %s2166_s13  ;;  %v1661_v10 = vmul.f32 -1.442695, %v1287_v26 }
0x1187   :  { %2063 = vpow2.f32 %v1661_v10 }
0x1194   :  { %v2064_v27 = vpop.eup %2063 }
0x1195   :  { %v1293_v11 = vadd.f32 1.0, %v2064_v27 }
0x1197   :  { %2065 = vrcp.f32 %v1293_v11 }
0x11a4   :  { %v2066_v12 = vpop.eup %2065 }
0x11a5   :  { %v1307_v17 = vsub.f32 1.0, %v2066_v12  ;;  %v1313_v19 = vmul.f32 %v2066_v12, %v1122_v54 }
0x11f7   :  { %v1298_v28 = vpop.permute.xlu1 %1297 }
0x11f8   :  { %v1300_v13 = vmul.f32 %v2066_v12, %v1298_v28 }
0x11fa   :  { %1302 = vrot.lane.b32.xlu0 %v1300_v13, %s2169_s10 }
0x126c   :  { %v1303_v29 = vpop.permute.xlu0 %1302 }
0x126d   :  { %v1305_v15 = vadd.f32 %v1303_v29, %v1287_v26 }
0x126f   :  { %2067 = vtanh.f32 %v1305_v15 }
0x127c   :  { %v2068_v16 = vpop.eup %2067 }
0x127d   :  { %1309 = vrot.lane.b32.xlu1 %v2068_v16, %s2170_s5 }
0x12ef   :  { %v1310_v18 = vpop.permute.xlu1 %1309 }
0x12f0   :  { %v1312_v20 = vmul.f32 %v1310_v18, %v1307_v17 }
0x12f2   :  { %v1314_v21 = vadd.f32 %v1313_v19, %v1312_v20 }
0x12f4   :  { %1316 = vrot.lane.b32.xlu0 %v1314_v21, %s2170_s5 }
0x1366   :  { %v1317_v22 = vpop.permute.xlu0 %1316 }
0x1367   :  { %1987 = vmatmul.mubr.msk.f32.vlgmr.msra.gmra.mxu1 %vm61_vm1, %v1317_v22 }
0x1368   :  { %1990 = vmatpush3.msra.mxu1 %v2227_v1  ;;  %2005 = vmatprep.mubr.msk.f32.mxu1 %vm2168_vm0, %v2167_v2  ;;  %v1406_v1 = vld [vmem:[%s1405_s20] sm:$0x1] }
0x1369   :  { %1991 = vmatprep.subr.mxu1 %v2167_v2 }
0x136a   :  { %1992 = vmatpush3.msra.mxu1 %v2234_v3  ;;  %v1407_v3 = vmax.f32 %v1406_v1, 0.0 }
0x136b   :  { %1993 = vmatprep.subr.mxu1 %v2167_v2 }
0x136c   :  { %1994 = vmatpush3.msra.mxu1 %v2242_v4  ;;  %v1408_v4 = vsel %vm61_vm1, %v1407_v3, %v1314_v21 }
0x136d   :  { %1995 = vmatprep.subr.mxu1 %v2167_v2 }
0x136e   :  { %1996 = vmatpush3.msra.mxu1 %v2253_v5 }
0x136f   :  { %1997 = vmatprep.subr.mxu1 %v2167_v2 }
0x1370   :  { %1998 = vmatpush3.msra.mxu1 %v2260_v6 }
0x1371   :  { %1999 = vmatprep.subr.mxu1 %v2167_v2 }
0x1372   :  { %2000 = vmatpush3.msra.mxu1 %v2267_v7 }
0x1373   :  { %2001 = vmatprep.subr.mxu1 %v2167_v2 }
0x1374   :  { %2002 = vmatpush3.msra.mxu1 %v2274_v8 }
0x1375   :  { %2003 = vmatprep.subr.mxu1 %v2167_v2 }
0x1376   :  { %2004 = vmatpush3.msra.mxu1 %v2281_v9 }
0x1377   :  { %2006 = vmatmul.mubr.msk.f32.vlgmr.msra.gmra.mxu1 %vm63_vm2, %v1408_v4 }
0x1427   :  { %v2608_v5 = vpop.f32.mrf.mxu1 }
0x1429   :  { %v1988_v6 = vpop.f32.mrf.mxu1 }
0x1437   :  { %v1478_v23 = vpop.f32.mrf.mxu1 }
0x1438   :  { %v1479_v24 = vadd.f32 %v1478_v23, %v2297_v14  ;;  %v2617_v14 = vld [vmem:[%s2719_s6] sm:$0x1]  ;;  %s2171_s6 = smov [#allocation6]  }
0x1439   :  { %v2007_v7 = vpop.f32.mrf.mxu1  ;;  %v234_v37 = vadd.f32 %v2374_v40, %v2617_v14  ;;  %v2625_v49 = vadd.f32 %v2415_v63, %v2617_v14  ;;  %v2630_v50 = vadd.f32 %v2456_v36, %v2617_v14  ;;  %v2636_v52 = vadd.f32 %v2497_v60, %v2617_v14 }
0x143a   :  { %1489 = vrot.lane.b32.xlu1 %v1479_v24, %s2166_s13  ;;  %v1665_v25 = vmul.f32 -1.442695, %v1479_v24  ;;  %v2642_v63 = vadd.f32 %v2578_v59, %v2617_v14  ;;  %v2665_v19 = vadd.f32 %v2538_v34, %v2617_v14  ;;  %s1615_s13 = sshll.u32 %s2171_s6, 4  ;;  %s1616_s13 = int_to_ptr.vmem [resolvable:$true] %s1615_s13 }
0x143b   :  { %v238_v38 = vsel %vm237_vm3, %v234_v37, -inf  ;;  %v430_v51 = vsel %vm237_vm3, %v2625_v49, -inf  ;;  %v622_v53 = vsel %vm237_vm3, %v2630_v50, -inf  ;;  %v814_v36 = vsel %vm237_vm3, %v2636_v52, -inf  ;;  %p2124_p6 = scmp.lt.s32.totalorder %s1616_s13, %s1616_s13 }
0x143c   :  { %2069 = vpow2.f32 %v1665_v25  ;;  %v1198_v54 = vsel %vm237_vm3, %v2642_v63, -inf  ;;  %v1006_v22 = vsel %vm237_vm3, %v2665_v19, -inf }
0x1449   :  { %v2070_v8 = vpop.eup %2069 }
0x144a   :  { %v1485_v30 = vadd.f32 1.0, %v2070_v8 }
0x144c   :  { %2071 = vrcp.f32 %v1485_v30 }
0x1459   :  { %v2072_v2 = vpop.eup %2071 }
0x145a   :  { %v1499_v39 = vsub.f32 1.0, %v2072_v2  ;;  %v1505_v42 = vmul.f32 %v2072_v2, %v1314_v21  ;;  %v2670_v21 = vadd.f32 %v2608_v5, %v2617_v14 }
0x145c   :  { %v1390_v1 = vsel %vm237_vm3, %v2670_v21, -inf }
0x14ac   :  { %v1490_v9 = vpop.permute.xlu1 %1489 }
0x14ad   :  { %v1492_v31 = vmul.f32 %v2072_v2, %v1490_v9 }
0x14af   :  { %1494 = vrot.lane.b32.xlu0 %v1492_v31, %s2169_s10  ;;  %s2119_s10 = scalar_lea.vmem %s1616_s13, 16 }
0x14b0   :  { %p2120_p5 = scmp.ne.s32.totalorder %s1616_s13, %s2119_s10 }
0x1521   :  { %v1495_v32 = vpop.permute.xlu0 %1494 }
0x1522   :  { %v1497_v33 = vadd.f32 %v1495_v32, %v1479_v24 }
0x1524   :  { %2073 = vtanh.f32 %v1497_v33 }
0x1531   :  { %v2074_v35 = vpop.eup %2073 }
0x1532   :  { %1501 = vrot.lane.b32.xlu1 %v2074_v35, %s2170_s5 }
0x1556   :  { %239 = vmax.xlane.f32.xlu1 %v238_v38 }
0x15a4   :  { %v1502_v41 = vpop.permute.xlu1 %1501 }
0x15a5   :  { %v1504_v43 = vmul.f32 %v1502_v41, %v1499_v39 }
0x15a7   :  { %v1506_v44 = vadd.f32 %v1505_v42, %v1504_v43 }
0x15a9   :  { %1508 = vrot.lane.b32.xlu0 %v1506_v44, %s2170_s5  ;;  %s2123_s5 = scalar_lea.vmem %s1616_s13, 32 }
0x15aa   :  { %p2125_p7 = scmp.lt.s32.totalorder %s2123_s5, %s2119_s10 }
0x15ac   :  { %p2126_p8 = por %p2125_p7, %p2124_p6 }
0x15ae   :  { %p2127_p9 = pnand %p2126_p8, %p2120_p5 }
0x15df   :  { %v240_v45 = vpop.xlane.xlu1 %239 }
0x15e0   :  { %v241_v46 = vsub.f32 %v234_v37, %v240_v45 }
0x15e2   :  { %v242_v47 = vmul.f32 1.442695, %v241_v46 }
0x15e4   :  { %2075 = vpow2.f32 %v242_v47 }
0x15f1   :  { %v2076_v48 = vpop.eup %2075 }
0x15f2   :  { %v244_v40 = vsel %vm237_vm3, %v2076_v48, 0.0 }
0x15f3   :  { %245 = vadd.xlane.f32.xlu0 %v244_v40 }
0x15f7   :  { %431 = vmax.xlane.f32.xlu0 %v430_v51 }
0x15fb   :  { %623 = vmax.xlane.f32.xlu0 %v622_v53 }
0x15ff   :  { %815 = vmax.xlane.f32.xlu0 %v814_v36 }
0x1603   :  { %1199 = vmax.xlane.f32.xlu0 %v1198_v54 }
0x161b   :  { %v1509_v55 = vpop.permute.xlu0 %1508 }
0x161c   :  { %2017 = vmatmul.mubr.msk.f32.vlgmr.msra.gmra.mxu0 %vm61_vm1, %v1509_v55  ;;  %1598 = vst.msk [vmem:[#allocation6] sm:$0x1] %vm1597_vm4, %v1509_v55 }
0x167c   :  { %v246_v60 = vpop.xlane.xlu0 %245 }
0x167d   :  { %2077 = vlog2.f32 %v246_v60 }
0x1680   :  { %v432_v56 = vpop.xlane.xlu0 %431 }
0x1681   :  { %v433_v57 = vsub.f32 %v2625_v49, %v432_v56 }
0x1683   :  { %v434_v58 = vmul.f32 1.442695, %v433_v57 }
0x1684   :  { %v2650_v59 = vpop.xlane.xlu0 %623 }
0x1685   :  { %2079 = vpow2.f32 %v434_v58  ;;  %v625_v61 = vsub.f32 %v2630_v50, %v2650_v59 }
0x1687   :  { %v626_v62 = vmul.f32 1.442695, %v625_v61 }
0x1688   :  { %v2654_v26 = vpop.xlane.xlu0 %815 }
0x1689   :  { %2081 = vpow2.f32 %v626_v62  ;;  %v817_v27 = vsub.f32 %v2636_v52, %v2654_v26 }
0x168a   :  { %v2078_v0 = vpop.eup %2077 }
0x168b   :  { %v248_v10 = vmul.f32 0.6931472, %v2078_v0  ;;  %v818_v13 = vmul.f32 1.442695, %v817_v27 }
0x168c   :  { %v2658_v11 = vpop.xlane.xlu0 %1199 }
0x168d   :  { %v249_v12 = vadd.f32 %v248_v10, %v240_v45  ;;  %v1201_v29 = vsub.f32 %v2642_v63, %v2658_v11  ;;  %2083 = vpow2.f32 %v818_v13 }
0x168f   :  { %v250_v28 = vsub.f32 %v234_v37, %v249_v12  ;;  %v1202_v16 = vmul.f32 1.442695, %v1201_v29 }
0x1691   :  { %251 = vst [vmem:[#allocation4] sm:$0x1] %v250_v28  ;;  %2085 = vpow2.f32 %v1202_v16 }
0x1692   :  { %v2080_v15 = vpop.eup %2079 }
0x1693   :  { %v436_v17 = vsel %vm237_vm3, %v2080_v15, 0.0 }
0x1694   :  { %437 = vadd.xlane.f32.xlu1 %v436_v17 }
0x1696   :  { %v2082_v18 = vpop.eup %2081 }
0x1697   :  { %v628_v20 = vsel %vm237_vm3, %v2082_v18, 0.0 }
0x1698   :  { %629 = vadd.xlane.f32.xlu1 %v628_v20 }
0x169a   :  { %v2084_v3 = vpop.eup %2083 }
0x169b   :  { %v820_v34 = vsel %vm237_vm3, %v2084_v3, 0.0 }
0x169c   :  { %1007 = vmax.xlane.f32.xlu1 %v1006_v22 }
0x169e   :  { %v2086_v4 = vpop.eup %2085 }
0x169f   :  { %v1204_v6 = vsel %vm237_vm3, %v2086_v4, 0.0 }
0x16a0   :  { %1391 = vmax.xlane.f32.xlu1 %v1390_v1 }
0x16a4   :  { %821 = vadd.xlane.f32.xlu1 %v820_v34 }
0x16a8   :  { %1205 = vadd.xlane.f32.xlu1 %v1204_v6 }
0x16dc   :  { %v1578_v23 = vpop.f32.mrf.mxu0 }
0x16dd   :  { %v2679_v5 = vadd.f32 %v1578_v23, %v2617_v14 }
0x16de   :  { %v2018_v24 = vpop.f32.mrf.mxu0 }
0x16df   :  { %v1582_v7 = vsel %vm237_vm3, %v2679_v5, -inf }
0x16e0   :  { %1583 = vmax.xlane.f32.xlu0 %v1582_v7 }
0x171d   :  { %v438_v25 = vpop.xlane.xlu1 %437 }
0x171e   :  { %2087 = vlog2.f32 %v438_v25 }
0x1721   :  { %v630_v8 = vpop.xlane.xlu1 %629 }
0x1722   :  { %2089 = vlog2.f32 %v630_v8 }
0x1725   :  { %v2683_v30 = vpop.xlane.xlu1 %1007 }
0x1726   :  { %v1009_v2 = vsub.f32 %v2665_v19, %v2683_v30 }
0x1728   :  { %v1010_v9 = vmul.f32 1.442695, %v1009_v2 }
0x1729   :  { %v2687_v31 = vpop.xlane.xlu1 %1391 }
0x172a   :  { %2091 = vpow2.f32 %v1010_v9  ;;  %v1393_v32 = vsub.f32 %v2670_v21, %v2687_v31 }
0x172b   :  { %v2088_v33 = vpop.eup %2087 }
0x172c   :  { %v440_v35 = vmul.f32 0.6931472, %v2088_v33  ;;  %v1394_v14 = vmul.f32 1.442695, %v1393_v32 }
0x172d   :  { %v822_v37 = vpop.xlane.xlu1 %821 }
0x172e   :  { %v441_v38 = vadd.f32 %v440_v35, %v432_v56  ;;  %2093 = vpow2.f32 %v1394_v14 }
0x172f   :  { %v2090_v39 = vpop.eup %2089  ;;  %2095 = vlog2.f32 %v822_v37 }
0x1730   :  { %v442_v41 = vsub.f32 %v2625_v49, %v441_v38  ;;  %v632_v42 = vmul.f32 0.6931472, %v2090_v39 }
0x1731   :  { %v1206_v43 = vpop.xlane.xlu1 %1205 }
0x1732   :  { %443 = vst [vmem:[#allocation4 + $0x1] sm:$0x1] %v442_v41  ;;  %v633_v44 = vadd.f32 %v632_v42, %v2650_v59  ;;  %2097 = vlog2.f32 %v1206_v43 }
0x1734   :  { %v634_v45 = vsub.f32 %v2630_v50, %v633_v44 }
0x1736   :  { %635 = vst [vmem:[#allocation4 + $0x2] sm:$0x1] %v634_v45 }
0x1737   :  { %v2092_v46 = vpop.eup %2091 }
0x1738   :  { %v1012_v47 = vsel %vm237_vm3, %v2092_v46, 0.0 }
0x1739   :  { %1013 = vadd.xlane.f32.xlu0 %v1012_v47 }
0x173b   :  { %v2094_v48 = vpop.eup %2093 }
0x173c   :  { %v2096_v40 = vpop.eup %2095  ;;  %v1396_v51 = vsel %vm237_vm3, %v2094_v48, 0.0 }
0x173d   :  { %v824_v53 = vmul.f32 0.6931472, %v2096_v40  ;;  %1397 = vadd.xlane.f32.xlu0 %v1396_v51 }
0x173f   :  { %v2098_v49 = vpop.eup %2097  ;;  %v825_v36 = vadd.f32 %v824_v53, %v2654_v26 }
0x1740   :  { %v1208_v54 = vmul.f32 0.6931472, %v2098_v49 }
0x1741   :  { %v826_v55 = vsub.f32 %v2636_v52, %v825_v36 }
0x1742   :  { %v1209_v60 = vadd.f32 %v1208_v54, %v2658_v11 }
0x1743   :  { %827 = vst [vmem:[#allocation4 + $0x3] sm:$0x1] %v826_v55 }
0x1744   :  { %v1210_v50 = vsub.f32 %v2642_v63, %v1209_v60 }
0x1746   :  { %1211 = vst [vmem:[#allocation4 + $0x5] sm:$0x1] %v1210_v50 }
0x1769   :  { %v1584_v56 = vpop.xlane.xlu0 %1583 }
0x176a   :  { %v1585_v57 = vsub.f32 %v2679_v5, %v1584_v56 }
0x176c   :  { %v1586_v58 = vmul.f32 1.442695, %v1585_v57 }
0x176e   :  { %2099 = vpow2.f32 %v1586_v58 }
0x177b   :  { %v2100_v59 = vpop.eup %2099 }
0x177c   :  { %v1588_v61 = vsel %vm237_vm3, %v2100_v59, 0.0 }
0x177d   :  { %1589 = vadd.xlane.f32.xlu1 %v1588_v61 }
0x177e   :  { %2130 = shalt.err (!%p2127_p9)
}
0x177f   :  { %1618 = dma.vmem_to_hbm [thread:$0]  %s1616_s13, 16, %s2721_s8, [#allocation7]  }
0x1780   :  { %s2172_s8 = smov [#allocation4]  }
0x1781   :  { %s1605_s24 = sshll.u32 %s2172_s8, 4  ;;  %s1606_s24 = int_to_ptr.vmem [resolvable:$true] %s1605_s24 }
0x1782   :  { %s2139_s25 = scalar_lea.vmem %s1606_s24, 128  ;;  %p2144_p11 = scmp.lt.s32.totalorder %s1606_s24, %s1606_s24 }
0x1783   :  { %p2140_p10 = scmp.ne.s32.totalorder %s1606_s24, %s2139_s25  ;;  %p2145_p12 = scmp.lt.s32.totalorder %s2139_s25, %s2139_s25 }
0x1785   :  { %p2146_p13 = por %p2145_p12, %p2144_p11 }
0x1787   :  { %p2147_p0 = pnand %p2146_p13, %p2140_p10 }
0x17c2   :  { %v1014_v52 = vpop.xlane.xlu0 %1013 }
0x17c3   :  { %2101 = vlog2.f32 %v1014_v52 }
0x17c6   :  { %v1398_v63 = vpop.xlane.xlu0 %1397 }
0x17c7   :  { %2103 = vlog2.f32 %v1398_v63 }
0x17d0   :  { %v2102_v62 = vpop.eup %2101 }
0x17d1   :  { %v1016_v26 = vmul.f32 0.6931472, %v2102_v62 }
0x17d3   :  { %v1017_v0 = vadd.f32 %v1016_v26, %v2683_v30 }
0x17d4   :  { %v2104_v10 = vpop.eup %2103 }
0x17d5   :  { %v1018_v27 = vsub.f32 %v2665_v19, %v1017_v0  ;;  %v1400_v11 = vmul.f32 0.6931472, %v2104_v10 }
0x17d7   :  { %1019 = vst [vmem:[#allocation4 + $0x4] sm:$0x1] %v1018_v27  ;;  %v1401_v12 = vadd.f32 %v1400_v11, %v2687_v31 }
0x17d9   :  { %v1402_v28 = vsub.f32 %v2670_v21, %v1401_v12 }
0x17db   :  { %1403 = vst [vmem:[#allocation4 + $0x6] sm:$0x1] %v1402_v28 }
0x1806   :  { %v1590_v13 = vpop.xlane.xlu1 %1589 }
0x1807   :  { %2105 = vlog2.f32 %v1590_v13 }
0x1814   :  { %v2106_v29 = vpop.eup %2105 }
0x1815   :  { %v1592_v15 = vmul.f32 0.6931472, %v2106_v29 }
0x1817   :  { %v1593_v16 = vadd.f32 %v1592_v15, %v1584_v56 }
0x1819   :  { %v1594_v17 = vsub.f32 %v2679_v5, %v1593_v16 }
0x181b   :  { %1595 = vst [vmem:[#allocation4 + $0x7] sm:$0x1] %v1594_v17 }
0x181c   :  { %2150 = shalt.err (!%p2147_p0)
}
0x181d   :  { %1608 = dma.vmem_to_hbm [thread:$0]  %s1606_s24, 128, %s2720_s7, [#allocation5]  }
0x181e   :  { %2161 = dma.done.wait [#allocation5], 128  }
0x181f   :  { %2162 = vsyncadd [#allocation5], 4294967168 }
0x1820   :  { %2163 = dma.done.wait [#allocation7], 16  }
0x1821   :  { %2164 = vsyncadd [#allocation7], 4294967280 }
0x1822   :  { %1625 = vsyncpa [#allocation5], 1 }
0x1823   :  { %1626 = vsyncpa [#allocation7], 1 }

</bundles_post_ra>
